<compile_context>
chip_gen: v7x
topology: tpu7x:2x2x1
jax: 0.10.0
libtpu: 0.0.40
codegen_flags: <defaults>
</compile_context>

<pallas_src>
import math
from functools import partial

import jax
import jax.numpy as jnp
from jax import lax
from jax.experimental import pallas as pl
from jax.experimental.pallas import tpu as pltpu

# ---------------------------------------------------------------------------
# Config (small, consistent with the module: hidden % heads == 0)
# ---------------------------------------------------------------------------
HIDDEN = 32
NUM_HEADS = 4
HEAD_DIM = HIDDEN // NUM_HEADS
INTERMEDIATE = 64
LN_EPS = 1e-12
B, S1, S2 = 2, 8, 16


def _layer_norm(x, gamma, beta, eps):
    mu = jnp.mean(x, axis=-1, keepdims=True)
    xc = x - mu
    var = jnp.mean(xc * xc, axis=-1, keepdims=True)
    return xc * lax.rsqrt(var + eps) * gamma + beta


def _erf_poly(x):
    # Abramowitz & Stegun 7.1.26 (max abs error 1.5e-7): only exp / mul / add /
    # where -> guaranteed Mosaic lowering, numerically "exact" at f32 tolerance.
    a1, a2, a3, a4, a5 = 0.254829592, -0.284496736, 1.421413741, -1.453152027, 1.061405429
    p = 0.3275911
    ax = jnp.abs(x)
    t = 1.0 / (1.0 + p * ax)
    poly = ((((a5 * t + a4) * t + a3) * t + a2) * t + a1) * t
    pos = 1.0 - poly * jnp.exp(-ax * ax)
    return jnp.where(x >= 0.0, pos, -pos)


def _gelu_exact(x, erf_fn=_erf_poly):
    # exact (erf-based) GELU, matching torch.nn.functional.gelu default
    return 0.5 * x * (1.0 + erf_fn(x * 0.7071067811865476))


# ---------------------------------------------------------------------------
# Pallas kernel: one call, no grid — whole batch + weights resident in VMEM.
# ---------------------------------------------------------------------------
def _cross_attn_layer_kernel(
    s1_ref, s2_ref, mask_ref,
    wq_ref, bq_ref, wkv_ref, bkv_ref,
    wao_ref, bao_ref, g1_ref, be1_ref,
    wi_ref, bi_ref, wo_ref, bo_ref, g2_ref, be2_ref,
    out_ref,
    *, batch, s1_len, s2_len,
):
    f32 = jnp.float32
    bf16 = jnp.bfloat16

    x1 = s1_ref[...]          # (B*S1, H) f32  (also the residual input)
    x2 = s2_ref[...]          # (B*S2, H) f32
    mask = mask_ref[...]      # (B, 1, S2)     additive mask

    # --- RobertaCoAttention: fused projections ------------------------------
    # 1/sqrt(head_dim) is pre-folded into wq/bq in the wrapper.
    q = jnp.dot(x1.astype(bf16), wq_ref[...], preferred_element_type=f32) + bq_ref[...]
    kv = jnp.dot(x2.astype(bf16), wkv_ref[...], preferred_element_type=f32) + bkv_ref[...]
    k = kv[:, :HIDDEN]
    v = kv[:, HIDDEN:]

    q3 = q.reshape(batch, s1_len, HIDDEN)
    k3 = k.reshape(batch, s2_len, HIDDEN)
    v3 = v.reshape(batch, s2_len, HIDDEN)

    # Per-head attention, batched over B via single-batch-dim einsums.
    # The head concat is folded into the attention-output projection:
    #   ctx @ Wao == sum_h ctx_h @ Wao[h*D:(h+1)*D, :]
    attn_acc = jnp.zeros((batch * s1_len, HIDDEN), dtype=f32)
    for h in range(NUM_HEADS):
        lo = h * HEAD_DIM
        hi = lo + HEAD_DIM
        qh = q3[:, :, lo:hi]                                   # (B, S1, D)
        kh = k3[:, :, lo:hi]                                   # (B, S2, D)
        vh = v3[:, :, lo:hi]                                   # (B, S2, D)

        scores = jnp.einsum('bqd,bkd->bqk', qh.astype(bf16), kh.astype(bf16),
                            preferred_element_type=f32)        # (B, S1, S2)
        scores = scores + mask                                 # (B,1,S2) broadcast
        scores = scores - jnp.max(scores, axis=-1, keepdims=True)
        p = jnp.exp(scores)
        p = p * pl.reciprocal(jnp.sum(p, axis=-1, keepdims=True), approx=True)

        ctx = jnp.einsum('bqk,bkd->bqd', p.astype(bf16), vh.astype(bf16),
                         preferred_element_type=f32)           # (B, S1, D)
        ctx2d = ctx.reshape(batch * s1_len, HEAD_DIM)
        attn_acc = attn_acc + jnp.dot(ctx2d.astype(bf16), wao_ref[h],
                                      preferred_element_type=f32)

    # --- RobertaSelfOutput: dense + residual + LayerNorm ---------------------
    attn_dense = attn_acc + bao_ref[...]
    attn_out = _layer_norm(attn_dense + x1, g1_ref[...], be1_ref[...], LN_EPS)

    # --- RobertaIntermediate: dense + GELU -----------------------------------
    inter = _gelu_exact(jnp.dot(attn_out.astype(bf16), wi_ref[...],
                                preferred_element_type=f32) + bi_ref[...])

    # --- RobertaOutput: dense + residual + LayerNorm --------------------------
    out_dense = jnp.dot(inter.astype(bf16), wo_ref[...],
                        preferred_element_type=f32) + bo_ref[...]
    layer_out = _layer_norm(out_dense + attn_out, g2_ref[...], be2_ref[...], LN_EPS)

    out_ref[...] = layer_out


def roberta_cross_attention_layer(s1, s2, mask, params):
    """s1: (B,S1,H)  s2: (B,S2,H)  mask: (B,1,S2) additive."""
    b, s1_len, hidden = s1.shape
    _, s2_len, _ = s2.shape
    assert hidden == HIDDEN

    inv_sqrt_d = 1.0 / math.sqrt(HEAD_DIM)
    bf16 = jnp.bfloat16

    # Weight prep in the wrapper (one-time, outside the kernel):
    #   * fold 1/sqrt(d) into Wq/bq
    #   * fuse K|V weights into one (H, 2H) matrix
    #   * split Wao per head for the block-matmul accumulation
    #   * ship matmul weights as bf16 (halves weight bytes; f32 accumulation in-kernel)
    wq = (params["wq"] * inv_sqrt_d).astype(bf16)
    bq = (params["bq"] * inv_sqrt_d).astype(jnp.float32)
    wkv = jnp.concatenate([params["wk"], params["wv"]], axis=1).astype(bf16)   # (H, 2H)
    bkv = jnp.concatenate([params["bk"], params["bv"]], axis=1).astype(jnp.float32)
    wao = params["wao"].reshape(NUM_HEADS, HEAD_DIM, hidden).astype(bf16)      # (NH, D, H)
    wi = params["wi"].astype(bf16)
    wo = params["wo"].astype(bf16)

    weights = [
        wq, bq, wkv, bkv,
        wao, params["bao"], params["g1"], params["be1"],
        wi, params["bi"], wo, params["bo"], params["g2"], params["be2"],
    ]

    vmem = pl.BlockSpec(memory_space=pltpu.MemorySpace.VMEM)
    kernel = partial(_cross_attn_layer_kernel, batch=b, s1_len=s1_len, s2_len=s2_len)

    # TODO(synk): at realistic sizes (H=768+, long sequences) re-introduce a tiled
    # grid over S1 / the FFN contraction sized for v7x's 64 MiB VMEM, and present
    # a lane-dense (>=128-wide) output slab.
    out2d = pl.pallas_call(
        kernel,
        out_shape=jax.ShapeDtypeStruct((b * s1_len, hidden), jnp.float32),
        in_specs=[vmem] * (3 + len(weights)),
        out_specs=vmem,
    )(s1.reshape(b * s1_len, hidden), s2.reshape(b * s2_len, hidden), mask, *weights)

    return out2d.reshape(b, s1_len, hidden)


# ---------------------------------------------------------------------------
# Pure-JAX reference (f32 everywhere, exact erf; used only for correctness)
# ---------------------------------------------------------------------------
def reference(s1, s2, mask, p):
    q = s1 @ p["wq"] + p["bq"]
    k = s2 @ p["wk"] + p["bk"]
    v = s2 @ p["wv"] + p["bv"]

    def split(x):
        b, s, h = x.shape
        return x.reshape(b, s, NUM_HEADS, HEAD_DIM).transpose(0, 2, 1, 3)

    qh, kh, vh = split(q), split(k), split(v)
    scores = jnp.einsum("bhqd,bhkd->bhqk", qh, kh) / math.sqrt(HEAD_DIM)
    scores = scores + mask[:, :, None, :]              # (B,1,1,S2) broadcast
    probs = jax.nn.softmax(scores, axis=-1)
    ctx = jnp.einsum("bhqk,bhkd->bhqd", probs, vh)
    ctx = ctx.transpose(0, 2, 1, 3).reshape(s1.shape[0], S1, HIDDEN)

    attn = _layer_norm(ctx @ p["wao"] + p["bao"] + s1, p["g1"], p["be1"], LN_EPS)
    inter = _gelu_exact(attn @ p["wi"] + p["bi"], erf_fn=lax.erf)
    out = _layer_norm(inter @ p["wo"] + p["bo"] + attn, p["g2"], p["be2"], LN_EPS)
    return out


# ---------------------------------------------------------------------------
# Deterministic parameter init + driver
# ---------------------------------------------------------------------------
def init_params(key):
    ks = jax.random.split(key, 16)
    n = lambda k, shape, s=0.02: (s * jax.random.normal(k, shape)).astype(jnp.float32)
    return {
        "wq": n(ks[0], (HIDDEN, HIDDEN)), "bq": n(ks[1], (1, HIDDEN)),
        "wk": n(ks[2], (HIDDEN, HIDDEN)), "bk": n(ks[3], (1, HIDDEN)),
        "wv": n(ks[4], (HIDDEN, HIDDEN)), "bv": n(ks[5], (1, HIDDEN)),
        "wao": n(ks[6], (HIDDEN, HIDDEN)), "bao": n(ks[7], (1, HIDDEN)),
        "g1": 1.0 + n(ks[8], (1, HIDDEN), 0.1), "be1": n(ks[9], (1, HIDDEN)),
        "wi": n(ks[10], (HIDDEN, INTERMEDIATE)), "bi": n(ks[11], (1, INTERMEDIATE)),
        "wo": n(ks[12], (INTERMEDIATE, HIDDEN)), "bo": n(ks[13], (1, HIDDEN)),
        "g2": 1.0 + n(ks[14], (1, HIDDEN), 0.1), "be2": n(ks[15], (1, HIDDEN)),
    }


if __name__ == "__main__":
    key = jax.random.PRNGKey(0)
    k_s1, k_s2, k_mask, k_params = jax.random.split(key, 4)

    s1 = jax.random.normal(k_s1, (B, S1, HIDDEN), dtype=jnp.float32)
    s2 = jax.random.normal(k_s2, (B, S2, HIDDEN), dtype=jnp.float32)
    keep = jax.random.bernoulli(k_mask, p=0.8, shape=(B, 1, S2))
    mask = jnp.where(keep, 0.0, -10000.0).astype(jnp.float32)   # additive mask

    params = init_params(k_params)

    out = roberta_cross_attention_layer(s1, s2, mask, params)
    out = jax.block_until_ready(out)

    ref = jax.block_until_ready(reference(s1, s2, mask, params))
    assert out.shape == (B, S1, HIDDEN)
    # Tolerance covers bf16 matmul operands + approx softmax reciprocal + erf
    # polynomial (1.5e-7) vs. the pure-f32 reference.
    err = float(jnp.max(jnp.abs(out - ref)))
    assert err < 2e-2, err

    print("KERNEL_OK")
</pallas_src>

<mosaic_0001>
module attributes {stable_mosaic.version = 11 : i64} {
  func.func @_cross_attn_layer_kernel(%arg0: memref<16x32xf32, #tpu.memory_space<vmem>>, %arg1: memref<32x32xf32, #tpu.memory_space<vmem>>, %arg2: memref<2x1x16xf32, #tpu.memory_space<vmem>>, %arg3: memref<32x32xbf16, #tpu.memory_space<vmem>>, %arg4: memref<1x32xf32, #tpu.memory_space<vmem>>, %arg5: memref<32x64xbf16, #tpu.memory_space<vmem>>, %arg6: memref<1x64xf32, #tpu.memory_space<vmem>>, %arg7: memref<4x8x32xbf16, #tpu.memory_space<vmem>>, %arg8: memref<1x32xf32, #tpu.memory_space<vmem>>, %arg9: memref<1x32xf32, #tpu.memory_space<vmem>>, %arg10: memref<1x32xf32, #tpu.memory_space<vmem>>, %arg11: memref<32x64xbf16, #tpu.memory_space<vmem>>, %arg12: memref<1x64xf32, #tpu.memory_space<vmem>>, %arg13: memref<64x32xbf16, #tpu.memory_space<vmem>>, %arg14: memref<1x32xf32, #tpu.memory_space<vmem>>, %arg15: memref<1x32xf32, #tpu.memory_space<vmem>>, %arg16: memref<1x32xf32, #tpu.memory_space<vmem>>, %arg17: memref<16x32xf32, #tpu.memory_space<vmem>>) attributes {dimension_semantics = [], scalar_prefetch = 0 : i64, scratch_operands = 0 : i64, tpu.core_type = #tpu.core_type<tc>} {
    %c0 = arith.constant 0 : index
    %c0_0 = arith.constant 0 : index
    %0 = vector.load %arg0[%c0, %c0_0] : memref<16x32xf32, #tpu.memory_space<vmem>>, vector<16x32xf32>
    %c0_1 = arith.constant 0 : index
    %c0_2 = arith.constant 0 : index
    %1 = vector.load %arg1[%c0_1, %c0_2] : memref<32x32xf32, #tpu.memory_space<vmem>>, vector<32x32xf32>
    %c0_3 = arith.constant 0 : index
    %c0_4 = arith.constant 0 : index
    %c0_5 = arith.constant 0 : index
    %2 = vector.load %arg2[%c0_3, %c0_4, %c0_5] : memref<2x1x16xf32, #tpu.memory_space<vmem>>, vector<2x1x16xf32>
    %3 = arith.truncf %0 : vector<16x32xf32> to vector<16x32xbf16>
    %c0_6 = arith.constant 0 : index
    %c0_7 = arith.constant 0 : index
    %4 = vector.load %arg3[%c0_6, %c0_7] : memref<32x32xbf16, #tpu.memory_space<vmem>>, vector<32x32xbf16>
    %cst = arith.constant dense<0.000000e+00> : vector<16x32xf32>
    %5 = tpu.matmul %3, %4, %cst {dimension_numbers = #tpu.dot_dimension_numbers<[1], [0], [0], [1], [0, 0, 1, 1], [], []>} : vector<16x32xbf16>, vector<32x32xbf16>, vector<16x32xf32> -> vector<16x32xf32>
    %c0_8 = arith.constant 0 : index
    %c0_9 = arith.constant 0 : index
    %6 = vector.load %arg4[%c0_8, %c0_9] : memref<1x32xf32, #tpu.memory_space<vmem>>, vector<1x32xf32>
    %7 = vector.broadcast %6 : vector<1x32xf32> to vector<16x32xf32>
    %8 = arith.addf %5, %7 : vector<16x32xf32>
    %9 = arith.truncf %1 : vector<32x32xf32> to vector<32x32xbf16>
    %c0_10 = arith.constant 0 : index
    %c0_11 = arith.constant 0 : index
    %10 = vector.load %arg5[%c0_10, %c0_11] : memref<32x64xbf16, #tpu.memory_space<vmem>>, vector<32x64xbf16>
    %cst_12 = arith.constant dense<0.000000e+00> : vector<32x64xf32>
    %11 = tpu.matmul %9, %10, %cst_12 {dimension_numbers = #tpu.dot_dimension_numbers<[1], [0], [0], [1], [0, 0, 1, 1], [], []>} : vector<32x32xbf16>, vector<32x64xbf16>, vector<32x64xf32> -> vector<32x64xf32>
    %c0_13 = arith.constant 0 : index
    %c0_14 = arith.constant 0 : index
    %12 = vector.load %arg6[%c0_13, %c0_14] : memref<1x64xf32, #tpu.memory_space<vmem>>, vector<1x64xf32>
    %13 = vector.broadcast %12 : vector<1x64xf32> to vector<32x64xf32>
    %14 = arith.addf %11, %13 : vector<32x64xf32>
    %15 = vector.extract_strided_slice %14 {offsets = [0, 0], sizes = [32, 32], strides = [1, 1]} : vector<32x64xf32> to vector<32x32xf32>
    %16 = vector.extract_strided_slice %14 {offsets = [0, 32], sizes = [32, 32], strides = [1, 1]} : vector<32x64xf32> to vector<32x32xf32>
    %17 = vector.shape_cast %8 : vector<16x32xf32> to vector<2x8x32xf32>
    %18 = vector.shape_cast %15 : vector<32x32xf32> to vector<2x16x32xf32>
    %19 = vector.shape_cast %16 : vector<32x32xf32> to vector<2x16x32xf32>
    %cst_15 = arith.constant 0.000000e+00 : f32
    %20 = vector.broadcast %cst_15 : f32 to vector<16x32xf32>
    %21 = vector.extract_strided_slice %17 {offsets = [0, 0, 0], sizes = [2, 8, 8], strides = [1, 1, 1]} : vector<2x8x32xf32> to vector<2x8x8xf32>
    %22 = vector.extract_strided_slice %18 {offsets = [0, 0, 0], sizes = [2, 16, 8], strides = [1, 1, 1]} : vector<2x16x32xf32> to vector<2x16x8xf32>
    %23 = vector.extract_strided_slice %19 {offsets = [0, 0, 0], sizes = [2, 16, 8], strides = [1, 1, 1]} : vector<2x16x32xf32> to vector<2x16x8xf32>
    %24 = arith.truncf %21 : vector<2x8x8xf32> to vector<2x8x8xbf16>
    %25 = arith.truncf %22 : vector<2x16x8xf32> to vector<2x16x8xbf16>
    "tpu.trace_start"() <{level = 10 : i32, message = "bqd,bkd->bqk"}> : () -> ()
    %cst_16 = arith.constant dense<0.000000e+00> : vector<2x8x16xf32>
    %26 = tpu.matmul %24, %25, %cst_16 {dimension_numbers = #tpu.dot_dimension_numbers<[2], [2], [1], [1], [0, 0, 0, 1, 1, 1], [0], [0]>} : vector<2x8x8xbf16>, vector<2x16x8xbf16>, vector<2x8x16xf32> -> vector<2x8x16xf32>
    "tpu.trace_stop"() : () -> ()
    %27 = vector.broadcast %2 : vector<2x1x16xf32> to vector<2x8x16xf32>
    %28 = arith.addf %26, %27 : vector<2x8x16xf32>
    %cst_17 = arith.constant dense<0xFF800000> : vector<2x8xf32>
    %29 = vector.multi_reduction <maximumf>, %28, %cst_17 [2] : vector<2x8x16xf32> to vector<2x8xf32>
    %30 = vector.shape_cast %29 : vector<2x8xf32> to vector<2x8x1xf32>
    %31 = vector.broadcast %30 : vector<2x8x1xf32> to vector<2x8x16xf32>
    %32 = arith.subf %28, %31 : vector<2x8x16xf32>
    %33 = math.exp %32 : vector<2x8x16xf32>
    %cst_18 = arith.constant dense<0.000000e+00> : vector<2x8xf32>
    %34 = vector.multi_reduction <add>, %33, %cst_18 [2] : vector<2x8x16xf32> to vector<2x8xf32>
    %35 = vector.shape_cast %34 : vector<2x8xf32> to vector<2x8x1xf32>
    %36 = tpu.reciprocal %35 {approx = true} : vector<2x8x1xf32> -> vector<2x8x1xf32>
    %37 = vector.broadcast %36 : vector<2x8x1xf32> to vector<2x8x16xf32>
    %38 = arith.mulf %33, %37 : vector<2x8x16xf32>
    %39 = arith.truncf %38 : vector<2x8x16xf32> to vector<2x8x16xbf16>
    %40 = arith.truncf %23 : vector<2x16x8xf32> to vector<2x16x8xbf16>
    "tpu.trace_start"() <{level = 10 : i32, message = "bqk,bkd->bqd"}> : () -> ()
    %cst_19 = arith.constant dense<0.000000e+00> : vector<2x8x8xf32>
    %41 = tpu.matmul %39, %40, %cst_19 {dimension_numbers = #tpu.dot_dimension_numbers<[2], [1], [1], [2], [0, 0, 0, 1, 1, 2], [0], [0]>} : vector<2x8x16xbf16>, vector<2x16x8xbf16>, vector<2x8x8xf32> -> vector<2x8x8xf32>
    "tpu.trace_stop"() : () -> ()
    %42 = vector.shape_cast %41 : vector<2x8x8xf32> to vector<16x8xf32>
    %43 = arith.truncf %42 : vector<16x8xf32> to vector<16x8xbf16>
    %c0_20 = arith.constant 0 : index
    %c0_21 = arith.constant 0 : index
    %c0_22 = arith.constant 0 : index
    %44 = vector.load %arg7[%c0_20, %c0_21, %c0_22] : memref<4x8x32xbf16, #tpu.memory_space<vmem>>, vector<1x8x32xbf16>
    %45 = vector.shape_cast %44 : vector<1x8x32xbf16> to vector<8x32xbf16>
    %cst_23 = arith.constant dense<0.000000e+00> : vector<16x32xf32>
    %46 = tpu.matmul %43, %45, %cst_23 {dimension_numbers = #tpu.dot_dimension_numbers<[1], [0], [0], [1], [0, 0, 1, 1], [], []>} : vector<16x8xbf16>, vector<8x32xbf16>, vector<16x32xf32> -> vector<16x32xf32>
    %47 = arith.addf %20, %46 : vector<16x32xf32>
    %48 = vector.extract_strided_slice %17 {offsets = [0, 0, 8], sizes = [2, 8, 8], strides = [1, 1, 1]} : vector<2x8x32xf32> to vector<2x8x8xf32>
    %49 = vector.extract_strided_slice %18 {offsets = [0, 0, 8], sizes = [2, 16, 8], strides = [1, 1, 1]} : vector<2x16x32xf32> to vector<2x16x8xf32>
    %50 = vector.extract_strided_slice %19 {offsets = [0, 0, 8], sizes = [2, 16, 8], strides = [1, 1, 1]} : vector<2x16x32xf32> to vector<2x16x8xf32>
    %51 = arith.truncf %48 : vector<2x8x8xf32> to vector<2x8x8xbf16>
    %52 = arith.truncf %49 : vector<2x16x8xf32> to vector<2x16x8xbf16>
    "tpu.trace_start"() <{level = 10 : i32, message = "bqd,bkd->bqk"}> : () -> ()
    %cst_24 = arith.constant dense<0.000000e+00> : vector<2x8x16xf32>
    %53 = tpu.matmul %51, %52, %cst_24 {dimension_numbers = #tpu.dot_dimension_numbers<[2], [2], [1], [1], [0, 0, 0, 1, 1, 1], [0], [0]>} : vector<2x8x8xbf16>, vector<2x16x8xbf16>, vector<2x8x16xf32> -> vector<2x8x16xf32>
    "tpu.trace_stop"() : () -> ()
    %54 = vector.broadcast %2 : vector<2x1x16xf32> to vector<2x8x16xf32>
    %55 = arith.addf %53, %54 : vector<2x8x16xf32>
    %cst_25 = arith.constant dense<0xFF800000> : vector<2x8xf32>
    %56 = vector.multi_reduction <maximumf>, %55, %cst_25 [2] : vector<2x8x16xf32> to vector<2x8xf32>
    %57 = vector.shape_cast %56 : vector<2x8xf32> to vector<2x8x1xf32>
    %58 = vector.broadcast %57 : vector<2x8x1xf32> to vector<2x8x16xf32>
    %59 = arith.subf %55, %58 : vector<2x8x16xf32>
    %60 = math.exp %59 : vector<2x8x16xf32>
    %cst_26 = arith.constant dense<0.000000e+00> : vector<2x8xf32>
    %61 = vector.multi_reduction <add>, %60, %cst_26 [2] : vector<2x8x16xf32> to vector<2x8xf32>
    %62 = vector.shape_cast %61 : vector<2x8xf32> to vector<2x8x1xf32>
    %63 = tpu.reciprocal %62 {approx = true} : vector<2x8x1xf32> -> vector<2x8x1xf32>
    %64 = vector.broadcast %63 : vector<2x8x1xf32> to vector<2x8x16xf32>
    %65 = arith.mulf %60, %64 : vector<2x8x16xf32>
    %66 = arith.truncf %65 : vector<2x8x16xf32> to vector<2x8x16xbf16>
    %67 = arith.truncf %50 : vector<2x16x8xf32> to vector<2x16x8xbf16>
    "tpu.trace_start"() <{level = 10 : i32, message = "bqk,bkd->bqd"}> : () -> ()
    %cst_27 = arith.constant dense<0.000000e+00> : vector<2x8x8xf32>
    %68 = tpu.matmul %66, %67, %cst_27 {dimension_numbers = #tpu.dot_dimension_numbers<[2], [1], [1], [2], [0, 0, 0, 1, 1, 2], [0], [0]>} : vector<2x8x16xbf16>, vector<2x16x8xbf16>, vector<2x8x8xf32> -> vector<2x8x8xf32>
    "tpu.trace_stop"() : () -> ()
    %69 = vector.shape_cast %68 : vector<2x8x8xf32> to vector<16x8xf32>
    %70 = arith.truncf %69 : vector<16x8xf32> to vector<16x8xbf16>
    %c1 = arith.constant 1 : index
    %c0_28 = arith.constant 0 : index
    %c0_29 = arith.constant 0 : index
    %71 = vector.load %arg7[%c1, %c0_28, %c0_29] : memref<4x8x32xbf16, #tpu.memory_space<vmem>>, vector<1x8x32xbf16>
    %72 = vector.shape_cast %71 : vector<1x8x32xbf16> to vector<8x32xbf16>
    %cst_30 = arith.constant dense<0.000000e+00> : vector<16x32xf32>
    %73 = tpu.matmul %70, %72, %cst_30 {dimension_numbers = #tpu.dot_dimension_numbers<[1], [0], [0], [1], [0, 0, 1, 1], [], []>} : vector<16x8xbf16>, vector<8x32xbf16>, vector<16x32xf32> -> vector<16x32xf32>
    %74 = arith.addf %47, %73 : vector<16x32xf32>
    %75 = vector.extract_strided_slice %17 {offsets = [0, 0, 16], sizes = [2, 8, 8], strides = [1, 1, 1]} : vector<2x8x32xf32> to vector<2x8x8xf32>
    %76 = vector.extract_strided_slice %18 {offsets = [0, 0, 16], sizes = [2, 16, 8], strides = [1, 1, 1]} : vector<2x16x32xf32> to vector<2x16x8xf32>
    %77 = vector.extract_strided_slice %19 {offsets = [0, 0, 16], sizes = [2, 16, 8], strides = [1, 1, 1]} : vector<2x16x32xf32> to vector<2x16x8xf32>
    %78 = arith.truncf %75 : vector<2x8x8xf32> to vector<2x8x8xbf16>
    %79 = arith.truncf %76 : vector<2x16x8xf32> to vector<2x16x8xbf16>
    "tpu.trace_start"() <{level = 10 : i32, message = "bqd,bkd->bqk"}> : () -> ()
    %cst_31 = arith.constant dense<0.000000e+00> : vector<2x8x16xf32>
    %80 = tpu.matmul %78, %79, %cst_31 {dimension_numbers = #tpu.dot_dimension_numbers<[2], [2], [1], [1], [0, 0, 0, 1, 1, 1], [0], [0]>} : vector<2x8x8xbf16>, vector<2x16x8xbf16>, vector<2x8x16xf32> -> vector<2x8x16xf32>
    "tpu.trace_stop"() : () -> ()
    %81 = vector.broadcast %2 : vector<2x1x16xf32> to vector<2x8x16xf32>
    %82 = arith.addf %80, %81 : vector<2x8x16xf32>
    %cst_32 = arith.constant dense<0xFF800000> : vector<2x8xf32>
    %83 = vector.multi_reduction <maximumf>, %82, %cst_32 [2] : vector<2x8x16xf32> to vector<2x8xf32>
    %84 = vector.shape_cast %83 : vector<2x8xf32> to vector<2x8x1xf32>
    %85 = vector.broadcast %84 : vector<2x8x1xf32> to vector<2x8x16xf32>
    %86 = arith.subf %82, %85 : vector<2x8x16xf32>
    %87 = math.exp %86 : vector<2x8x16xf32>
    %cst_33 = arith.constant dense<0.000000e+00> : vector<2x8xf32>
    %88 = vector.multi_reduction <add>, %87, %cst_33 [2] : vector<2x8x16xf32> to vector<2x8xf32>
    %89 = vector.shape_cast %88 : vector<2x8xf32> to vector<2x8x1xf32>
    %90 = tpu.reciprocal %89 {approx = true} : vector<2x8x1xf32> -> vector<2x8x1xf32>
    %91 = vector.broadcast %90 : vector<2x8x1xf32> to vector<2x8x16xf32>
    %92 = arith.mulf %87, %91 : vector<2x8x16xf32>
    %93 = arith.truncf %92 : vector<2x8x16xf32> to vector<2x8x16xbf16>
    %94 = arith.truncf %77 : vector<2x16x8xf32> to vector<2x16x8xbf16>
    "tpu.trace_start"() <{level = 10 : i32, message = "bqk,bkd->bqd"}> : () -> ()
    %cst_34 = arith.constant dense<0.000000e+00> : vector<2x8x8xf32>
    %95 = tpu.matmul %93, %94, %cst_34 {dimension_numbers = #tpu.dot_dimension_numbers<[2], [1], [1], [2], [0, 0, 0, 1, 1, 2], [0], [0]>} : vector<2x8x16xbf16>, vector<2x16x8xbf16>, vector<2x8x8xf32> -> vector<2x8x8xf32>
    "tpu.trace_stop"() : () -> ()
    %96 = vector.shape_cast %95 : vector<2x8x8xf32> to vector<16x8xf32>
    %97 = arith.truncf %96 : vector<16x8xf32> to vector<16x8xbf16>
    %c2 = arith.constant 2 : index
    %c0_35 = arith.constant 0 : index
    %c0_36 = arith.constant 0 : index
    %98 = vector.load %arg7[%c2, %c0_35, %c0_36] : memref<4x8x32xbf16, #tpu.memory_space<vmem>>, vector<1x8x32xbf16>
    %99 = vector.shape_cast %98 : vector<1x8x32xbf16> to vector<8x32xbf16>
    %cst_37 = arith.constant dense<0.000000e+00> : vector<16x32xf32>
    %100 = tpu.matmul %97, %99, %cst_37 {dimension_numbers = #tpu.dot_dimension_numbers<[1], [0], [0], [1], [0, 0, 1, 1], [], []>} : vector<16x8xbf16>, vector<8x32xbf16>, vector<16x32xf32> -> vector<16x32xf32>
    %101 = arith.addf %74, %100 : vector<16x32xf32>
    %102 = vector.extract_strided_slice %17 {offsets = [0, 0, 24], sizes = [2, 8, 8], strides = [1, 1, 1]} : vector<2x8x32xf32> to vector<2x8x8xf32>
    %103 = vector.extract_strided_slice %18 {offsets = [0, 0, 24], sizes = [2, 16, 8], strides = [1, 1, 1]} : vector<2x16x32xf32> to vector<2x16x8xf32>
    %104 = vector.extract_strided_slice %19 {offsets = [0, 0, 24], sizes = [2, 16, 8], strides = [1, 1, 1]} : vector<2x16x32xf32> to vector<2x16x8xf32>
    %105 = arith.truncf %102 : vector<2x8x8xf32> to vector<2x8x8xbf16>
    %106 = arith.truncf %103 : vector<2x16x8xf32> to vector<2x16x8xbf16>
    "tpu.trace_start"() <{level = 10 : i32, message = "bqd,bkd->bqk"}> : () -> ()
    %cst_38 = arith.constant dense<0.000000e+00> : vector<2x8x16xf32>
    %107 = tpu.matmul %105, %106, %cst_38 {dimension_numbers = #tpu.dot_dimension_numbers<[2], [2], [1], [1], [0, 0, 0, 1, 1, 1], [0], [0]>} : vector<2x8x8xbf16>, vector<2x16x8xbf16>, vector<2x8x16xf32> -> vector<2x8x16xf32>
    "tpu.trace_stop"() : () -> ()
    %108 = vector.broadcast %2 : vector<2x1x16xf32> to vector<2x8x16xf32>
    %109 = arith.addf %107, %108 : vector<2x8x16xf32>
    %cst_39 = arith.constant dense<0xFF800000> : vector<2x8xf32>
    %110 = vector.multi_reduction <maximumf>, %109, %cst_39 [2] : vector<2x8x16xf32> to vector<2x8xf32>
    %111 = vector.shape_cast %110 : vector<2x8xf32> to vector<2x8x1xf32>
    %112 = vector.broadcast %111 : vector<2x8x1xf32> to vector<2x8x16xf32>
    %113 = arith.subf %109, %112 : vector<2x8x16xf32>
    %114 = math.exp %113 : vector<2x8x16xf32>
    %cst_40 = arith.constant dense<0.000000e+00> : vector<2x8xf32>
    %115 = vector.multi_reduction <add>, %114, %cst_40 [2] : vector<2x8x16xf32> to vector<2x8xf32>
    %116 = vector.shape_cast %115 : vector<2x8xf32> to vector<2x8x1xf32>
    %117 = tpu.reciprocal %116 {approx = true} : vector<2x8x1xf32> -> vector<2x8x1xf32>
    %118 = vector.broadcast %117 : vector<2x8x1xf32> to vector<2x8x16xf32>
    %119 = arith.mulf %114, %118 : vector<2x8x16xf32>
    %120 = arith.truncf %119 : vector<2x8x16xf32> to vector<2x8x16xbf16>
    %121 = arith.truncf %104 : vector<2x16x8xf32> to vector<2x16x8xbf16>
    "tpu.trace_start"() <{level = 10 : i32, message = "bqk,bkd->bqd"}> : () -> ()
    %cst_41 = arith.constant dense<0.000000e+00> : vector<2x8x8xf32>
    %122 = tpu.matmul %120, %121, %cst_41 {dimension_numbers = #tpu.dot_dimension_numbers<[2], [1], [1], [2], [0, 0, 0, 1, 1, 2], [0], [0]>} : vector<2x8x16xbf16>, vector<2x16x8xbf16>, vector<2x8x8xf32> -> vector<2x8x8xf32>
    "tpu.trace_stop"() : () -> ()
    %123 = vector.shape_cast %122 : vector<2x8x8xf32> to vector<16x8xf32>
    %124 = arith.truncf %123 : vector<16x8xf32> to vector<16x8xbf16>
    %c3 = arith.constant 3 : index
    %c0_42 = arith.constant 0 : index
    %c0_43 = arith.constant 0 : index
    %125 = vector.load %arg7[%c3, %c0_42, %c0_43] : memref<4x8x32xbf16, #tpu.memory_space<vmem>>, vector<1x8x32xbf16>
    %126 = vector.shape_cast %125 : vector<1x8x32xbf16> to vector<8x32xbf16>
    %cst_44 = arith.constant dense<0.000000e+00> : vector<16x32xf32>
    %127 = tpu.matmul %124, %126, %cst_44 {dimension_numbers = #tpu.dot_dimension_numbers<[1], [0], [0], [1], [0, 0, 1, 1], [], []>} : vector<16x8xbf16>, vector<8x32xbf16>, vector<16x32xf32> -> vector<16x32xf32>
    %128 = arith.addf %101, %127 : vector<16x32xf32>
    %c0_45 = arith.constant 0 : index
    %c0_46 = arith.constant 0 : index
    %129 = vector.load %arg8[%c0_45, %c0_46] : memref<1x32xf32, #tpu.memory_space<vmem>>, vector<1x32xf32>
    %130 = vector.broadcast %129 : vector<1x32xf32> to vector<16x32xf32>
    %131 = arith.addf %128, %130 : vector<16x32xf32>
    %132 = arith.addf %131, %0 : vector<16x32xf32>
    %c0_47 = arith.constant 0 : index
    %c0_48 = arith.constant 0 : index
    %133 = vector.load %arg9[%c0_47, %c0_48] : memref<1x32xf32, #tpu.memory_space<vmem>>, vector<1x32xf32>
    %c0_49 = arith.constant 0 : index
    %c0_50 = arith.constant 0 : index
    %134 = vector.load %arg10[%c0_49, %c0_50] : memref<1x32xf32, #tpu.memory_space<vmem>>, vector<1x32xf32>
    %cst_51 = arith.constant dense<0.000000e+00> : vector<16xf32>
    %135 = vector.multi_reduction <add>, %132, %cst_51 [1] : vector<16x32xf32> to vector<16xf32>
    %136 = vector.shape_cast %135 : vector<16xf32> to vector<16x1xf32>
    %cst_52 = arith.constant 3.200000e+01 : f32
    %137 = vector.broadcast %cst_52 : f32 to vector<16x1xf32>
    %138 = arith.divf %136, %137 : vector<16x1xf32>
    %139 = vector.broadcast %138 : vector<16x1xf32> to vector<16x32xf32>
    %140 = arith.subf %132, %139 : vector<16x32xf32>
    %141 = arith.mulf %140, %140 : vector<16x32xf32>
    %cst_53 = arith.constant dense<0.000000e+00> : vector<16xf32>
    %142 = vector.multi_reduction <add>, %141, %cst_53 [1] : vector<16x32xf32> to vector<16xf32>
    %143 = vector.shape_cast %142 : vector<16xf32> to vector<16x1xf32>
    %cst_54 = arith.constant 3.200000e+01 : f32
    %144 = vector.broadcast %cst_54 : f32 to vector<16x1xf32>
    %145 = arith.divf %143, %144 : vector<16x1xf32>
    %cst_55 = arith.constant 9.99999996E-13 : f32
    %146 = vector.broadcast %cst_55 : f32 to vector<16x1xf32>
    %147 = arith.addf %145, %146 : vector<16x1xf32>
    %148 = math.rsqrt %147 : vector<16x1xf32>
    %149 = vector.broadcast %148 : vector<16x1xf32> to vector<16x32xf32>
    %150 = arith.mulf %140, %149 : vector<16x32xf32>
    %151 = vector.broadcast %133 : vector<1x32xf32> to vector<16x32xf32>
    %152 = arith.mulf %150, %151 : vector<16x32xf32>
    %153 = vector.broadcast %134 : vector<1x32xf32> to vector<16x32xf32>
    %154 = arith.addf %152, %153 : vector<16x32xf32>
    %155 = arith.truncf %154 : vector<16x32xf32> to vector<16x32xbf16>
    %c0_56 = arith.constant 0 : index
    %c0_57 = arith.constant 0 : index
    %156 = vector.load %arg11[%c0_56, %c0_57] : memref<32x64xbf16, #tpu.memory_space<vmem>>, vector<32x64xbf16>
    %cst_58 = arith.constant dense<0.000000e+00> : vector<16x64xf32>
    %157 = tpu.matmul %155, %156, %cst_58 {dimension_numbers = #tpu.dot_dimension_numbers<[1], [0], [0], [1], [0, 0, 1, 1], [], []>} : vector<16x32xbf16>, vector<32x64xbf16>, vector<16x64xf32> -> vector<16x64xf32>
    %c0_59 = arith.constant 0 : index
    %c0_60 = arith.constant 0 : index
    %158 = vector.load %arg12[%c0_59, %c0_60] : memref<1x64xf32, #tpu.memory_space<vmem>>, vector<1x64xf32>
    %159 = vector.broadcast %158 : vector<1x64xf32> to vector<16x64xf32>
    %160 = arith.addf %157, %159 : vector<16x64xf32>
    %cst_61 = arith.constant 5.000000e-01 : f32
    %161 = vector.broadcast %cst_61 : f32 to vector<16x64xf32>
    %162 = arith.mulf %161, %160 : vector<16x64xf32>
    %cst_62 = arith.constant 0.707106769 : f32
    %163 = vector.broadcast %cst_62 : f32 to vector<16x64xf32>
    %164 = arith.mulf %160, %163 : vector<16x64xf32>
    %165 = math.absf %164 : vector<16x64xf32>
    %cst_63 = arith.constant 0.327591091 : f32
    %166 = vector.broadcast %cst_63 : f32 to vector<16x64xf32>
    %167 = arith.mulf %166, %165 : vector<16x64xf32>
    %cst_64 = arith.constant 1.000000e+00 : f32
    %168 = vector.broadcast %cst_64 : f32 to vector<16x64xf32>
    %169 = arith.addf %168, %167 : vector<16x64xf32>
    %cst_65 = arith.constant 1.000000e+00 : f32
    %170 = vector.broadcast %cst_65 : f32 to vector<16x64xf32>
    %171 = arith.divf %170, %169 : vector<16x64xf32>
    %cst_66 = arith.constant 1.06140542 : f32
    %172 = vector.broadcast %cst_66 : f32 to vector<16x64xf32>
    %173 = arith.mulf %172, %171 : vector<16x64xf32>
    %cst_67 = arith.constant -1.45315206 : f32
    %174 = vector.broadcast %cst_67 : f32 to vector<16x64xf32>
    %175 = arith.addf %173, %174 : vector<16x64xf32>
    %176 = arith.mulf %175, %171 : vector<16x64xf32>
    %cst_68 = arith.constant 1.42141378 : f32
    %177 = vector.broadcast %cst_68 : f32 to vector<16x64xf32>
    %178 = arith.addf %176, %177 : vector<16x64xf32>
    %179 = arith.mulf %178, %171 : vector<16x64xf32>
    %cst_69 = arith.constant -0.284496725 : f32
    %180 = vector.broadcast %cst_69 : f32 to vector<16x64xf32>
    %181 = arith.addf %179, %180 : vector<16x64xf32>
    %182 = arith.mulf %181, %171 : vector<16x64xf32>
    %cst_70 = arith.constant 0.254829586 : f32
    %183 = vector.broadcast %cst_70 : f32 to vector<16x64xf32>
    %184 = arith.addf %182, %183 : vector<16x64xf32>
    %185 = arith.mulf %184, %171 : vector<16x64xf32>
    %cst_71 = arith.constant 0.000000e+00 : f32
    %186 = vector.broadcast %cst_71 : f32 to vector<16x64xf32>
    %187 = arith.subf %186, %165 : vector<16x64xf32>
    %188 = arith.mulf %187, %165 : vector<16x64xf32>
    %189 = math.exp %188 : vector<16x64xf32>
    %190 = arith.mulf %185, %189 : vector<16x64xf32>
    %cst_72 = arith.constant 1.000000e+00 : f32
    %191 = vector.broadcast %cst_72 : f32 to vector<16x64xf32>
    %192 = arith.subf %191, %190 : vector<16x64xf32>
    %cst_73 = arith.constant 0.000000e+00 : f32
    %193 = vector.broadcast %cst_73 : f32 to vector<16x64xf32>
    %194 = arith.cmpf oge, %164, %193 : vector<16x64xf32>
    %cst_74 = arith.constant 0.000000e+00 : f32
    %195 = vector.broadcast %cst_74 : f32 to vector<16x64xf32>
    %196 = arith.subf %195, %192 : vector<16x64xf32>
    %197 = arith.select %194, %192, %196 : vector<16x64xi1>, vector<16x64xf32>
    %cst_75 = arith.constant 1.000000e+00 : f32
    %198 = vector.broadcast %cst_75 : f32 to vector<16x64xf32>
    %199 = arith.addf %198, %197 : vector<16x64xf32>
    %200 = arith.mulf %162, %199 : vector<16x64xf32>
    %201 = arith.truncf %200 : vector<16x64xf32> to vector<16x64xbf16>
    %c0_76 = arith.constant 0 : index
    %c0_77 = arith.constant 0 : index
    %202 = vector.load %arg13[%c0_76, %c0_77] : memref<64x32xbf16, #tpu.memory_space<vmem>>, vector<64x32xbf16>
    %cst_78 = arith.constant dense<0.000000e+00> : vector<16x32xf32>
    %203 = tpu.matmul %201, %202, %cst_78 {dimension_numbers = #tpu.dot_dimension_numbers<[1], [0], [0], [1], [0, 0, 1, 1], [], []>} : vector<16x64xbf16>, vector<64x32xbf16>, vector<16x32xf32> -> vector<16x32xf32>
    %c0_79 = arith.constant 0 : index
    %c0_80 = arith.constant 0 : index
    %204 = vector.load %arg14[%c0_79, %c0_80] : memref<1x32xf32, #tpu.memory_space<vmem>>, vector<1x32xf32>
    %205 = vector.broadcast %204 : vector<1x32xf32> to vector<16x32xf32>
    %206 = arith.addf %203, %205 : vector<16x32xf32>
    %207 = arith.addf %206, %154 : vector<16x32xf32>
    %c0_81 = arith.constant 0 : index
    %c0_82 = arith.constant 0 : index
    %208 = vector.load %arg15[%c0_81, %c0_82] : memref<1x32xf32, #tpu.memory_space<vmem>>, vector<1x32xf32>
    %c0_83 = arith.constant 0 : index
    %c0_84 = arith.constant 0 : index
    %209 = vector.load %arg16[%c0_83, %c0_84] : memref<1x32xf32, #tpu.memory_space<vmem>>, vector<1x32xf32>
    %cst_85 = arith.constant dense<0.000000e+00> : vector<16xf32>
    %210 = vector.multi_reduction <add>, %207, %cst_85 [1] : vector<16x32xf32> to vector<16xf32>
    %211 = vector.shape_cast %210 : vector<16xf32> to vector<16x1xf32>
    %cst_86 = arith.constant 3.200000e+01 : f32
    %212 = vector.broadcast %cst_86 : f32 to vector<16x1xf32>
    %213 = arith.divf %211, %212 : vector<16x1xf32>
    %214 = vector.broadcast %213 : vector<16x1xf32> to vector<16x32xf32>
    %215 = arith.subf %207, %214 : vector<16x32xf32>
    %216 = arith.mulf %215, %215 : vector<16x32xf32>
    %cst_87 = arith.constant dense<0.000000e+00> : vector<16xf32>
    %217 = vector.multi_reduction <add>, %216, %cst_87 [1] : vector<16x32xf32> to vector<16xf32>
    %218 = vector.shape_cast %217 : vector<16xf32> to vector<16x1xf32>
    %cst_88 = arith.constant 3.200000e+01 : f32
    %219 = vector.broadcast %cst_88 : f32 to vector<16x1xf32>
    %220 = arith.divf %218, %219 : vector<16x1xf32>
    %cst_89 = arith.constant 9.99999996E-13 : f32
    %221 = vector.broadcast %cst_89 : f32 to vector<16x1xf32>
    %222 = arith.addf %220, %221 : vector<16x1xf32>
    %223 = math.rsqrt %222 : vector<16x1xf32>
    %224 = vector.broadcast %223 : vector<16x1xf32> to vector<16x32xf32>
    %225 = arith.mulf %215, %224 : vector<16x32xf32>
    %226 = vector.broadcast %208 : vector<1x32xf32> to vector<16x32xf32>
    %227 = arith.mulf %225, %226 : vector<16x32xf32>
    %228 = vector.broadcast %209 : vector<1x32xf32> to vector<16x32xf32>
    %229 = arith.addf %227, %228 : vector<16x32xf32>
    %c0_90 = arith.constant 0 : index
    %c0_91 = arith.constant 0 : index
    %230 = vector.load %arg17[%c0_90, %c0_91] : memref<16x32xf32, #tpu.memory_space<vmem>>, vector<16x32xf32>
    tpu.vector_store %arg17[%c0_90, %c0_91], %229 {strides = array<i32>} : memref<16x32xf32, #tpu.memory_space<vmem>>, vector<16x32xf32>,
    return
  }
}

</mosaic_0001>

<bundles_post_ra>
// kernel: tpu_custom_call.1
= control target key start
LH: loop header
LB: loop body
LE: loop exit
PB: predicated region body
PF: predicated region fallthrough
CT: control target
= control target key end

     0   :  { %s2747_s0 = inlined_call_operand.vmem [shape: f32[16,32], index: 0, kind: input, shape index: {}]   ;;  %s2748_s1 = inlined_call_operand.vmem [shape: f32[32,32], index: 1, kind: input, shape index: {}]   ;;  %s2749_s2 = inlined_call_operand.vmem [shape: f32[2,1,16], index: 2, kind: input, shape index: {}]   ;;  %s2750_s3 = inlined_call_operand.hbm [shape: bf16[32,32], index: 3, kind: input, shape index: {}]   ;;  %s2751_s4 = inlined_call_operand.hbm [shape: f32[1,32], index: 4, kind: input, shape index: {}]   ;;  %s2752_s5 = inlined_call_operand.hbm [shape: bf16[32,64], index: 5, kind: input, shape index: {}]   ;;  %s2753_s6 = inlined_call_operand.hbm [shape: f32[1,64], index: 6, kind: input, shape index: {}]   ;;  %s2754_s7 = inlined_call_operand.hbm [shape: bf16[4,8,32], index: 7, kind: input, shape index: {}]   ;;  %s2755_s8 = inlined_call_operand.hbm [shape: f32[1,32], index: 8, kind: input, shape index: {}]   ;;  %s2756_s9 = inlined_call_operand.hbm [shape: f32[1,32], index: 9, kind: input, shape index: {}]   ;;  %s2757_s10 = inlined_call_operand.vmem [shape: f32[1,32], index: 10, kind: input, shape index: {}]   ;;  %s2758_s11 = inlined_call_operand.vmem [shape: bf16[32,64], index: 11, kind: input, shape index: {}]   ;;  %s2759_s12 = inlined_call_operand.vmem [shape: f32[1,64], index: 12, kind: input, shape index: {}]   ;;  %s2760_s13 = inlined_call_operand.vmem [shape: bf16[64,32], index: 13, kind: input, shape index: {}]   ;;  %s2761_s14 = inlined_call_operand.vmem [shape: f32[1,32], index: 14, kind: input, shape index: {}]   ;;  %s2762_s15 = inlined_call_operand.vmem [shape: f32[1,32], index: 15, kind: input, shape index: {}]   ;;  %s2763_s16 = inlined_call_operand.vmem [shape: f32[1,32], index: 16, kind: input, shape index: {}]   ;;  %s2764_s17 = inlined_call_operand.hbm [shape: f32[16,32], index: 17, kind: output, shape index: {}]  }
   0x1   :  { %2767 = sst [smem:[#allocation20_spill]] %s2747_s0 }
   0x2   :  { %2768 = sst [smem:[#allocation21_spill]] %s2748_s1 }
   0x3   :  { %22 = vsyncpa [#allocation3], 0 }
   0x4   :  { %23 = vsyncpa [#allocation6], 0 }
   0x5   :  { %24 = vsyncpa [#allocation9], 0 }
   0x6   :  { %25 = vsyncpa [#allocation12], 0 }
   0x7   :  { %26 = vsyncpa [#allocation4], 0  ;;  %s2237_s24 = smov [#allocation5]   ;;  %s2238_s26 = smov [#allocation8]  }
   0x8   :  { %s51_s25 = sshll.u32 %s2237_s24, 4  ;;  %s73_s27 = sshll.u32 %s2238_s26, 4  ;;  %s52_s25 = int_to_ptr.vmem [resolvable:$true] %s51_s25  ;;  %s74_s27 = int_to_ptr.vmem [resolvable:$true] %s73_s27 }
   0x9   :  { %s2051_s0 = scalar_lea.hbm %s2751_s4, 16 }
   0xa   :  { %p2052_p0 = scmp.ne.s32.totalorder %s2751_s4, %s2051_s0  ;;  %p2055_p1 = scmp.lt.u32.totalorder %s2051_s0, %s2751_s4 }
   0xc   :  { %p2057_p2 = pnand %p2055_p1, %p2052_p0 }
   0xe   :  { %2060 = shalt.err (!%p2057_p2)
}
   0xf   :  { %s2061_s20 = scalar_lea.vmem %s52_s25, 16  ;;  %s2065_s21 = scalar_lea.vmem %s52_s25, 32 }
  0x10   :  { %p2062_p3 = scmp.ne.s32.totalorder %s52_s25, %s2061_s20  ;;  %p2066_p4 = scmp.lt.s32.totalorder %s52_s25, %s52_s25 }
  0x11   :  { %p2067_p5 = scmp.lt.s32.totalorder %s2065_s21, %s2061_s20 }
  0x13   :  { %p2068_p6 = por %p2067_p5, %p2066_p4 }
  0x15   :  { %p2069_p7 = pnand %p2068_p6, %p2062_p3 }
  0x17   :  { %2072 = shalt.err (!%p2069_p7)
}
  0x18   :  { %54 = dma.hbm_to_vmem [thread:$0]  %s2751_s4, 16, %s52_s25, [#allocation6]  }
  0x19   :  { %s2073_s28 = scalar_lea.hbm %s2753_s6, 16 }
  0x1a   :  { %p2074_p8 = scmp.ne.s32.totalorder %s2753_s6, %s2073_s28  ;;  %p2077_p9 = scmp.lt.u32.totalorder %s2073_s28, %s2753_s6 }
  0x1c   :  { %p2079_p10 = pnand %p2077_p9, %p2074_p8 }
  0x1e   :  { %2082 = shalt.err (!%p2079_p10)
}
  0x1f   :  { %s2083_s19 = scalar_lea.vmem %s74_s27, 16  ;;  %s2087_s1 = scalar_lea.vmem %s74_s27, 32 }
  0x20   :  { %p2084_p11 = scmp.ne.s32.totalorder %s74_s27, %s2083_s19  ;;  %p2088_p12 = scmp.lt.s32.totalorder %s74_s27, %s74_s27 }
  0x21   :  { %p2089_p13 = scmp.lt.s32.totalorder %s2087_s1, %s2083_s19 }
  0x23   :  { %p2090_p0 = por %p2089_p13, %p2088_p12 }
  0x25   :  { %p2091_p1 = pnand %p2090_p0, %p2084_p11 }
  0x27   :  { %2094 = shalt.err (!%p2091_p1)
}
  0x28   :  { %76 = dma.hbm_to_vmem [thread:$0]  %s2753_s6, 16, %s74_s27, [#allocation9]  }
  0x29   :  { %s2239_s20 = smov [#allocation11]   ;;  %s2240_s22 = smov [#allocation2]  }
  0x2a   :  { %s95_s21 = sshll.u32 %s2239_s20, 4  ;;  %s38_s23 = sshll.u32 %s2240_s22, 4  ;;  %s96_s21 = int_to_ptr.vmem [resolvable:$true] %s95_s21  ;;  %s2372_s23 = int_to_ptr.vmem [resolvable:$true] %s38_s23 }
  0x2b   :  { %s2095_s28 = scalar_lea.hbm %s2755_s8, 16 }
  0x2c   :  { %p2096_p2 = scmp.ne.s32.totalorder %s2755_s8, %s2095_s28  ;;  %p2099_p3 = scmp.lt.u32.totalorder %s2095_s28, %s2755_s8 }
  0x2e   :  { %p2101_p4 = pnand %p2099_p3, %p2096_p2 }
  0x30   :  { %2104 = shalt.err (!%p2101_p4)
}
  0x31   :  { %s2105_s6 = scalar_lea.vmem %s96_s21, 16  ;;  %s2109_s27 = scalar_lea.vmem %s96_s21, 32 }
  0x32   :  { %p2106_p5 = scmp.ne.s32.totalorder %s96_s21, %s2105_s6  ;;  %p2110_p6 = scmp.lt.s32.totalorder %s96_s21, %s96_s21 }
  0x33   :  { %p2111_p7 = scmp.lt.s32.totalorder %s2109_s27, %s2105_s6 }
  0x35   :  { %p2112_p8 = por %p2111_p7, %p2110_p6 }
  0x37   :  { %p2113_p9 = pnand %p2112_p8, %p2106_p5 }
  0x39   :  { %2116 = shalt.err (!%p2113_p9)
}
  0x3a   :  { %98 = dma.hbm_to_vmem [thread:$0]  %s2755_s8, 16, %s96_s21, [#allocation12]  }
  0x3b   :  { %s2117_s20 = scalar_lea.hbm %s2750_s3, 256 }
  0x3c   :  { %p2118_p10 = scmp.ne.s32.totalorder %s2750_s3, %s2117_s20  ;;  %p2121_p11 = scmp.lt.u32.totalorder %s2117_s20, %s2750_s3 }
  0x3e   :  { %p2123_p12 = pnand %p2121_p11, %p2118_p10 }
  0x40   :  { %2126 = shalt.err (!%p2123_p12)
}
  0x41   :  { %s2127_s29 = scalar_lea.vmem %s2372_s23, 256  ;;  %p2132_p0 = scmp.lt.s32.totalorder %s2372_s23, %s2372_s23 }
  0x42   :  { %p2128_p13 = scmp.ne.s32.totalorder %s2372_s23, %s2127_s29  ;;  %p2133_p1 = scmp.lt.s32.totalorder %s2127_s29, %s2127_s29 }
  0x44   :  { %p2134_p2 = por %p2133_p1, %p2132_p0 }
  0x46   :  { %p2135_p3 = pnand %p2134_p2, %p2128_p13 }
  0x48   :  { %2138 = shalt.err (!%p2135_p3)
}
  0x49   :  { %s2241_s8 = smov 64   ;;  %s2242_s21 = smov 4  }
  0x4a   :  { %44 = dma.hbm_to_vmem [thread:$0]  %s2750_s3, 256, %s2372_s23, [#allocation3], %s2241_s8, %s2241_s8, %s2242_s21  }
  0x4b   :  { %s2243_s18 = smov [#allocation7]   ;;  %s2244_s27 = smov [#allocation10]  }
  0x4c   :  { %s60_s6 = sshll.u32 %s2243_s18, 4  ;;  %s82_s19 = sshll.u32 %s2244_s27, 4  ;;  %s61_s6 = int_to_ptr.vmem [resolvable:$true] %s60_s6  ;;  %s2406_s19 = int_to_ptr.vmem [resolvable:$true] %s82_s19 }
  0x4d   :  { %s2139_s25 = scalar_lea.hbm %s2752_s5, 256 }
  0x4e   :  { %p2140_p4 = scmp.ne.s32.totalorder %s2752_s5, %s2139_s25  ;;  %p2143_p5 = scmp.lt.u32.totalorder %s2139_s25, %s2752_s5 }
  0x50   :  { %p2145_p6 = pnand %p2143_p5, %p2140_p4 }
  0x52   :  { %2148 = shalt.err (!%p2145_p6)
}
  0x53   :  { %s2149_s3 = scalar_lea.vmem %s61_s6, 256  ;;  %p2154_p8 = scmp.lt.s32.totalorder %s61_s6, %s61_s6 }
  0x54   :  { %p2150_p7 = scmp.ne.s32.totalorder %s61_s6, %s2149_s3  ;;  %p2155_p9 = scmp.lt.s32.totalorder %s2149_s3, %s2149_s3 }
  0x56   :  { %p2156_p10 = por %p2155_p9, %p2154_p8 }
  0x58   :  { %p2157_p11 = pnand %p2156_p10, %p2150_p7 }
  0x5a   :  { %2160 = shalt.err (!%p2157_p11)
}
  0x5b   :  { %66 = dma.hbm_to_vmem [thread:$0]  %s2752_s5, 256, %s61_s6, [#allocation6], %s2241_s8, %s2241_s8, %s2242_s21  }
  0x5c   :  { %s2161_s30 = scalar_lea.hbm %s2754_s7, 256 }
  0x5d   :  { %p2162_p12 = scmp.ne.s32.totalorder %s2754_s7, %s2161_s30  ;;  %p2165_p13 = scmp.lt.u32.totalorder %s2161_s30, %s2754_s7 }
  0x5f   :  { %p2167_p0 = pnand %p2165_p13, %p2162_p12 }
  0x61   :  { %2170 = shalt.err (!%p2167_p0)
}
  0x62   :  { %s2171_s25 = scalar_lea.vmem %s2406_s19, 256  ;;  %p2176_p2 = scmp.lt.s32.totalorder %s2406_s19, %s2406_s19 }
  0x63   :  { %p2172_p1 = scmp.ne.s32.totalorder %s2406_s19, %s2171_s25  ;;  %p2177_p3 = scmp.lt.s32.totalorder %s2171_s25, %s2171_s25 }
  0x65   :  { %p2178_p4 = por %p2177_p3, %p2176_p2 }
  0x67   :  { %p2179_p5 = pnand %p2178_p4, %p2172_p1 }
  0x69   :  { %2182 = shalt.err (!%p2179_p5)
}
  0x6a   :  { %88 = dma.hbm_to_vmem [thread:$0]  %s2754_s7, 256, %s2406_s19, [#allocation9], %s2241_s8, %s2241_s8, %s2242_s21  }
  0x6b   :  { %s2245_s20 = smov [#allocation13]   ;;  %s2183_s3 = scalar_lea.hbm %s2756_s9, 16 }
  0x6c   :  { %s105_s22 = sshll.u32 %s2245_s20, 4  ;;  %p2184_p6 = scmp.ne.s32.totalorder %s2756_s9, %s2183_s3  ;;  %s106_s22 = int_to_ptr.vmem [resolvable:$true] %s105_s22 }
  0x6d   :  { %p2187_p7 = scmp.lt.u32.totalorder %s2183_s3, %s2756_s9 }
  0x6f   :  { %p2189_p8 = pnand %p2187_p7, %p2184_p6 }
  0x71   :  { %2192 = shalt.err (!%p2189_p8)
}
  0x72   :  { %s2193_s30 = scalar_lea.vmem %s106_s22, 16  ;;  %s2197_s7 = scalar_lea.vmem %s106_s22, 32 }
  0x73   :  { %p2194_p9 = scmp.ne.s32.totalorder %s106_s22, %s2193_s30  ;;  %p2198_p10 = scmp.lt.s32.totalorder %s106_s22, %s106_s22 }
  0x74   :  { %p2199_p11 = scmp.lt.s32.totalorder %s2197_s7, %s2193_s30 }
  0x76   :  { %p2200_p12 = por %p2199_p11, %p2198_p10 }
  0x78   :  { %p2201_p13 = pnand %p2200_p12, %p2194_p9 }
  0x7a   :  { %2204 = shalt.err (!%p2201_p13)
}
  0x7b   :  { %108 = dma.hbm_to_vmem [thread:$0]  %s2756_s9, 16, %s106_s22, [#allocation12]  }
  0x7c   :  { %2227 = dma.done.wait [#allocation3], 256  }
  0x7d   :  { %2228 = vsyncadd [#allocation3], 4294967040 }
  0x7e   :  { %2229 = dma.done.wait [#allocation6], 272  }
  0x7f   :  { %2230 = vsyncadd [#allocation6], 4294967024 }
  0x80   :  { %2231 = dma.done.wait [#allocation9], 272  }
  0x81   :  { %2232 = vsyncadd [#allocation9], 4294967024 }
  0x82   :  { %2233 = dma.done.wait [#allocation12], 32  }
  0x83   :  { %2234 = vsyncadd [#allocation12], 4294967264  ;;  %v2246_v0 = vmov 0.0   ;;  %vm2247_vm0 = vmmov 0   ;;  %v1993_v1 = vld [vmem:[#allocation7] sm:$0xff]   ;;  %v1994_v2 = vld [vmem:[#allocation7 + $0x8] sm:$0xff]  }
  0x84   :  { %1816 = vmatprep.subr.bf16.mxu0 %v2246_v0  ;;  %1820 = vmatprep.mubr.msk.bf16.mxu0 %vm2247_vm0, %v2246_v0  ;;  %s2769_s18 = sld [smem:[#allocation21_spill]]  ;;  %vm177_vm1 = vcmask 261120   ;;  %v1995_v8 = vld [vmem:[#allocation2] sm:$0xff]   ;;  %v1996_v9 = vld [vmem:[#allocation2 + $0x8] sm:$0xff]   ;;  %s2770_s24 = sld [smem:[#allocation20_spill]]  ;;  %vm318_vm2 = vcmask 64512  }
  0x85   :  { %1824 = vmatprep.subr.bf16.mxu1 %v1993_v1  ;;  %1817 = vmatpush3.bf16.msra.mxu0 %v1995_v8  ;;  %v1719_v15 = vld [vmem:[#allocation8] ss:$0 sm:$0xff]  ;;  %v1715_v24 = vld [vmem:[#allocation5] ss:$0 sm:$0xff]  ;;  %s2248_s23 = smov 96   ;;  %s2249_s28 = smov 120  }
  0x86   :  { %1825 = vmatpush3.bf16.msra.mxu1 %v1993_v1  ;;  %1818 = vmatprep.subr.bf16.mxu0 %v2246_v0  ;;  %v2522_v37 = vld [vmem:[%s2749_s2] ss:$0 sm:$0xff]  ;;  %v2527_v39 = vld [vmem:[%s2749_s2 + $0x1] ss:$0 sm:$0xff]  ;;  %vm411_vm3 = vcmask 130048   ;;  %s2250_s2 = smov 88  }
  0x87   :  { %1826 = vmatprep.subr.bf16.mxu1 %v1994_v2  ;;  %s2251_s8 = smov 112   ;;  %vm756_vm4 = vcmask 1043456   ;;  %s2252_s21 = smov 80   ;;  %vm1602_vm7 = vcmask 523264  }
  0x88   :  { %s2253_s19 = smov 104   ;;  %s2254_s9 = smov 72  }
  0x89   :  { %1819 = vmatpush3.bf16.msra.mxu0 %v1996_v9  ;;  %s2255_s7 = smov [#allocation14]  }
  0x8a   :  { %v147_v3 = vld [vmem:[%s2769_s18] sm:$0xff]  ;;  %v148_v4 = vld [vmem:[%s2769_s18 + $0x8] sm:$0xff]  ;;  %v149_v5 = vld [vmem:[%s2769_s18 + $0x10] sm:$0xff]  ;;  %1827 = vmatpush3.bf16.msra.mxu1 %v1994_v2  ;;  %1832 = vmatprep.subr.bf16.mxu0 %v2246_v0 }
  0x8b   :  { %v222_v6 = vpack.c.bf16 %v148_v4, %v147_v3  ;;  %v150_v7 = vld [vmem:[%s2769_s18 + $0x18] sm:$0xff]  ;;  %v2474_v10 = vld [vmem:[%s2770_s24] sm:$0xff]  ;;  %v2479_v11 = vld [vmem:[%s2770_s24 + $0x8] sm:$0xff]  ;;  %1838 = vmatprep.subr.bf16.mxu1 %v2246_v0 }
  0x8c   :  { %v223_v12 = vpack.c.bf16 %v150_v7, %v149_v5  ;;  %v153_v13 = vpack.c.bf16 %v2479_v11, %v2474_v10 }
  0x8d   :  { %1828 = vmatprep.mubr.msk.bf16.mxu1 %vm177_vm1, %v222_v6 }
  0x8e   :  { %1829 = vmatmul.mubr.msk.bf16.vlgmr.msra.gmra.mrb[0].mxu1 %vm177_vm1, %v223_v12  ;;  %1821 = vmatmul.mubr.msk.bf16.vlgmr.msra.gmra.mrb[0].mxu0 %vm177_vm1, %v153_v13 }
  0x8f   :  { %1840 = vmatprep.mubr.msk.bf16.mxu1 %vm2247_vm0, %v2246_v0  ;;  %1834 = vmatprep.mubr.msk.bf16.mxu0 %vm2247_vm0, %v2246_v0 }
 0x161   :  { %v1830_v14 = vpop.f32.mrb[0].mxu1  ;;  %v215_v21 = vpop.f32.mrb[0].mxu0 }
 0x162   :  { %v287_v16 = vpop.f32.mrb[1].mxu1  ;;  %v296_v18 = vadd.f32 %v1830_v14, %v1719_v15  ;;  %v1822_v25 = vpop.f32.mrb[1].mxu0  ;;  %v216_v32 = vadd.f32 %v1715_v24, %v215_v21 }
 0x163   :  { %v1831_v17 = vpop.f32.mrb[2].mxu1  ;;  %v288_v22 = vadd.f32 %v1719_v15, %v287_v16  ;;  %v218_v27 = vpop.f32.mrb[2].mxu0 }
 0x164   :  { %v299_v19 = vadd.f32 %v1831_v17, %v1719_v15  ;;  %v290_v20 = vpop.f32.mrb[3].mxu1  ;;  %v1823_v29 = vpop.f32.mrb[3].mxu0  ;;  %v219_v31 = vadd.f32 %v1715_v24, %v218_v27  ;;  %v2508_v35 = vpack.c.bf16 %v216_v32, %v216_v32 }
 0x165   :  { %v291_v23 = vadd.f32 %v1719_v15, %v290_v20 }
 0x166   :  { %v2492_v26 = vpack.c.bf16 %v299_v19, %v296_v18  ;;  %v2504_v34 = vpack.c.bf16 %v219_v31, %v219_v31 }
 0x167   :  { %v2494_v28 = vpack.c.bf16 %v291_v23, %v288_v22 }
 0x168   :  { %484 = vrot.lane.b32.xlu1 %v2492_v26, %s2248_s23  ;;  %v369_v30 = vsel %vm318_vm2, %v2492_v26, 0 }
 0x169   :  { %1839 = vmatpush3.bf16.xpose.msra.mxu1 %v369_v30  ;;  %v323_v33 = vsel %vm318_vm2, %v2494_v28, 0 }
 0x16a   :  { %1833 = vmatpush3.bf16.xpose.msra.mxu0 %v323_v33  ;;  %1850 = vmatprep.subr.bf16.mxu1 %v2246_v0 }
 0x16b   :  { %1844 = vmatprep.subr.bf16.mxu0 %v2246_v0 }
 0x16c   :  { %535 = vrot.lane.b32.xlu1 %v2494_v28, %s2249_s28 }
 0x170   :  { %1841 = vmatmul.mubr.msk.bf16.vlgmr.msra.gmra.mrb[4].mxu1 %vm318_vm2, %v2504_v34 }
 0x171   :  { %1835 = vmatmul.mubr.msk.bf16.vlgmr.msra.gmra.mrb[4].mxu0 %vm318_vm2, %v2508_v35  ;;  %1852 = vmatprep.mubr.msk.bf16.mxu1 %vm2247_vm0, %v2246_v0 }
 0x172   :  { %1846 = vmatprep.mubr.msk.bf16.mxu0 %vm2247_vm0, %v2246_v0 }
 0x1da   :  { %v485_v36 = vpop.permute.xlu1 %484 }
 0x1db   :  { %1851 = vmatpush3.bf16.msra.mxu1 %v485_v36 }
 0x1dc   :  { %1862 = vmatprep.subr.bf16.mxu1 %v2246_v0 }
 0x1de   :  { %v536_v62 = vpop.permute.xlu1 %535 }
 0x1df   :  { %v541_v12 = vsel %vm318_vm2, %v536_v62, 0  ;;  %v752_v62 = vld [vmem:[#allocation10 + $0x4] sm:$0xf] }
 0x243   :  { %v405_v38 = vpop.f32.mrb[4].mxu1 }
 0x244   :  { %v359_v40 = vpop.f32.mrb[4].mxu0  ;;  %v1842_v41 = vpop.f32.mrb[5].mxu1  ;;  %v406_v47 = vadd.f32 %v2527_v39, %v405_v38 }
 0x245   :  { %v360_v42 = vadd.f32 %v2522_v37, %v359_v40  ;;  %v1836_v43 = vpop.f32.mrb[5].mxu0  ;;  %v408_v44 = vpop.f32.mrb[6].mxu1 }
 0x246   :  { %v362_v45 = vpop.f32.mrb[6].mxu0  ;;  %v1843_v46 = vpop.f32.mrb[7].mxu1  ;;  %v415_v50 = vsel %vm411_vm3, %v406_v47, -inf }
 0x247   :  { %v1837_v48 = vpop.f32.mrb[7].mxu0  ;;  %v412_v49 = vsel %vm411_vm3, %v360_v42, -inf }
 0x248   :  { %413 = vmax.xlane.f32.xlu0 %v412_v49 }
 0x24c   :  { %416 = vmax.xlane.f32.xlu0 %v415_v50 }
 0x262   :  { %437 = vrot.lane.b32.xlu0 %v2494_v28, %s2248_s23 }
 0x266   :  { %533 = vrot.lane.b32.xlu0 %v2508_v35, %s2249_s28 }
 0x2d5   :  { %v414_v51 = vpop.xlane.xlu0 %413 }
 0x2d6   :  { %v418_v52 = vsub.f32 %v360_v42, %v414_v51 }
 0x2d8   :  { %v420_v55 = vmul.f32 1.442695, %v418_v52 }
 0x2d9   :  { %v417_v53 = vpop.xlane.xlu0 %416 }
 0x2da   :  { %v419_v54 = vsub.f32 %v406_v47, %v417_v53 }
 0x2dc   :  { %v422_v56 = vmul.f32 1.442695, %v419_v54 }
 0x2dd   :  { %v438_v57 = vpop.permute.xlu0 %437 }
 0x2de   :  { %2003 = vpow2.f32 %v422_v56  ;;  %1845 = vmatpush3.bf16.msra.mxu0 %v438_v57  ;;  %v531_v57 = vld [vmem:[#allocation10] sm:$0xf] }
 0x2df   :  { %1856 = vmatprep.subr.bf16.mxu0 %v2246_v0  ;;  %2005 = vpow2.f32 %v420_v55 }
 0x2e1   :  { %v534_v14 = vpop.permute.xlu0 %533 }
 0x2e8   :  { %v2004_v58 = vpop.eup %2003 }
 0x2e9   :  { %v427_v59 = vsel %vm411_vm3, %v2004_v58, 0.0  ;;  %v2006_v60 = vpop.eup %2005 }
 0x2ea   :  { %428 = vadd.xlane.f32.xlu1 %v427_v59  ;;  %v424_v61 = vsel %vm411_vm3, %v2006_v60, 0.0 }
 0x2ee   :  { %425 = vadd.xlane.f32.xlu1 %v424_v61 }
 0x2ff   :  { %586 = vrot.lane.b32.xlu1 %v2492_v26, %s2249_s28 }
 0x303   :  { %584 = vrot.lane.b32.xlu1 %v2504_v34, %s2249_s28 }
 0x377   :  { %v429_v63 = vpop.xlane.xlu1 %428 }
 0x378   :  { %2007 = vrcp.f32 %v429_v63 }
 0x37b   :  { %v426_v1 = vpop.xlane.xlu1 %425 }
 0x37c   :  { %2009 = vrcp.f32 %v426_v1 }
 0x37f   :  { %v587_v4 = vpop.permute.xlu1 %586 }
 0x380   :  { %v592_v8 = vsel %vm318_vm2, %v587_v4, 0 }
 0x382   :  { %v2008_v2 = vpop.eup %2007 }
 0x383   :  { %v433_v3 = vmul.f32 %v2008_v2, %v2004_v58  ;;  %v585_v13 = vpop.permute.xlu1 %584 }
 0x385   :  { %v435_v5 = vpack.c.bf16 %v433_v3, %v433_v3  ;;  %v758_v3 = vsel %vm756_vm4, %v752_v62, 0 }
 0x386   :  { %v2010_v6 = vpop.eup %2009 }
 0x387   :  { %v432_v7 = vmul.f32 %v2010_v6, %v2006_v60  ;;  %1853 = vmatmul.mubr.msk.bf16.vlgmr.msra.gmra.mrb[8].mxu1 %vm411_vm3, %v435_v5  ;;  %v805_v60 = vsel %vm756_vm4, %v531_v57, 0 }
 0x388   :  { %1863 = vmatpush3.bf16.xpose.msra.mxu1 %v592_v8  ;;  %1864 = vmatprep.mubr.msk.bf16.mxu1 %vm2247_vm0, %v2246_v0 }
 0x389   :  { %v434_v9 = vpack.c.bf16 %v432_v7, %v432_v7  ;;  %1874 = vmatprep.subr.bf16.mxu1 %v2246_v0 }
 0x38b   :  { %1847 = vmatmul.mubr.msk.bf16.vlgmr.msra.gmra.mrb[8].mxu0 %vm411_vm3, %v434_v9 }
 0x38c   :  { %1857 = vmatpush3.bf16.xpose.msra.mxu0 %v541_v12  ;;  %1858 = vmatprep.mubr.msk.bf16.mxu0 %vm2247_vm0, %v2246_v0 }
 0x38d   :  { %1868 = vmatprep.subr.bf16.mxu0 %v2246_v0 }
 0x38f   :  { %1865 = vmatmul.mubr.msk.bf16.vlgmr.msra.gmra.mrb[12].mxu1 %vm318_vm2, %v585_v13 }
 0x390   :  { %1876 = vmatprep.mubr.msk.bf16.mxu1 %vm2247_vm0, %v2246_v0 }
 0x393   :  { %1859 = vmatmul.mubr.msk.bf16.vlgmr.msra.gmra.mrb[12].mxu0 %vm318_vm2, %v534_v14 }
 0x394   :  { %1870 = vmatprep.mubr.msk.bf16.mxu0 %vm2247_vm0, %v2246_v0 }
 0x45a   :  { %v2560_v15 = vpop.f32.mrb[8].mxu1 }
 0x45b   :  { %v1854_v16 = vpop.f32.mrb[9].mxu1 }
 0x45c   :  { %v527_v17 = vpop.f32.mrb[10].mxu1 }
 0x45d   :  { %v1855_v18 = vpop.f32.mrb[11].mxu1 }
 0x45e   :  { %v2562_v19 = vpop.f32.mrb[8].mxu0 }
 0x45f   :  { %v530_v20 = vpack.c.bf16 %v2560_v15, %v2562_v19  ;;  %v1848_v21 = vpop.f32.mrb[9].mxu0 }
 0x460   :  { %v480_v22 = vpop.f32.mrb[10].mxu0 }
 0x461   :  { %v1849_v23 = vpop.f32.mrb[11].mxu0 }
 0x462   :  { %v628_v24 = vpop.f32.mrb[12].mxu1 }
 0x463   :  { %v629_v25 = vadd.f32 %v2527_v39, %v628_v24  ;;  %v1866_v27 = vpop.f32.mrb[13].mxu1 }
 0x464   :  { %v631_v29 = vpop.f32.mrb[14].mxu1 }
 0x465   :  { %v1867_v30 = vpop.f32.mrb[15].mxu1  ;;  %v637_v31 = vsel %vm411_vm3, %v629_v25, -inf }
 0x466   :  { %638 = vmax.xlane.f32.xlu1 %v637_v31  ;;  %v577_v32 = vpop.f32.mrb[12].mxu0 }
 0x467   :  { %v578_v33 = vadd.f32 %v2522_v37, %v577_v32  ;;  %v1860_v36 = vpop.f32.mrb[13].mxu0 }
 0x468   :  { %v580_v38 = vpop.f32.mrb[14].mxu0 }
 0x469   :  { %v1861_v40 = vpop.f32.mrb[15].mxu0  ;;  %v634_v41 = vsel %vm411_vm3, %v578_v33, -inf }
 0x46a   :  { %635 = vmax.xlane.f32.xlu0 %v634_v41 }
 0x477   :  { %704 = vrot.lane.b32.xlu1 %v2492_v26, %s2250_s2 }
 0x47b   :  { %850 = vrot.lane.b32.xlu1 %v2494_v28, %s2251_s8 }
 0x47f   :  { %900 = vrot.lane.b32.xlu1 %v2492_v26, %s2251_s8 }
 0x483   :  { %898 = vrot.lane.b32.xlu1 %v2504_v34, %s2251_s8 }
 0x4f3   :  { %v639_v42 = vpop.xlane.xlu1 %638 }
 0x4f4   :  { %v641_v43 = vsub.f32 %v629_v25, %v639_v42 }
 0x4f6   :  { %v644_v44 = vmul.f32 1.442695, %v641_v43 }
 0x4f7   :  { %v705_v45 = vpop.permute.xlu1 %704  ;;  %v636_v46 = vpop.xlane.xlu0 %635 }
 0x4f8   :  { %2011 = vpow2.f32 %v644_v44  ;;  %v640_v47 = vsub.f32 %v578_v33, %v636_v46  ;;  %1875 = vmatpush3.bf16.msra.mxu1 %v705_v45 }
 0x4f9   :  { %1886 = vmatprep.subr.bf16.mxu1 %v2246_v0 }
 0x4fa   :  { %v642_v48 = vmul.f32 1.442695, %v640_v47 }
 0x4fb   :  { %v851_v63 = vpop.permute.xlu1 %850 }
 0x4fc   :  { %2013 = vpow2.f32 %v642_v48  ;;  %v856_v17 = vsel %vm318_vm2, %v851_v63, 0 }
 0x4ff   :  { %v901_v4 = vpop.permute.xlu1 %900 }
 0x500   :  { %v906_v5 = vsel %vm318_vm2, %v901_v4, 0 }
 0x502   :  { %v2012_v49 = vpop.eup %2011 }
 0x503   :  { %v649_v50 = vsel %vm411_vm3, %v2012_v49, 0.0  ;;  %v899_v6 = vpop.permute.xlu1 %898 }
 0x504   :  { %650 = vadd.xlane.f32.xlu0 %v649_v50 }
 0x506   :  { %v2014_v51 = vpop.eup %2013 }
 0x507   :  { %v646_v52 = vsel %vm411_vm3, %v2014_v51, 0.0 }
 0x508   :  { %647 = vadd.xlane.f32.xlu0 %v646_v52 }
 0x51e   :  { %658 = vrot.lane.b32.xlu0 %v2494_v28, %s2250_s2  ;;  %s1700_s2 = sshll.u32 %s2255_s7, 4  ;;  %s1701_s2 = int_to_ptr.vmem [resolvable:$true] %s1700_s2 }
 0x51f   :  { %p2210_p1 = scmp.lt.s32.totalorder %s1701_s2, %s1701_s2 }
 0x522   :  { %848 = vrot.lane.b32.xlu0 %v2508_v35, %s2251_s8  ;;  %s2205_s8 = scalar_lea.vmem %s1701_s2, 256 }
 0x523   :  { %p2206_p0 = scmp.ne.s32.totalorder %s1701_s2, %s2205_s8  ;;  %p2211_p2 = scmp.lt.s32.totalorder %s2205_s8, %s2205_s8 }
 0x525   :  { %p2212_p3 = por %p2211_p2, %p2210_p1 }
 0x527   :  { %p2213_p4 = pnand %p2212_p3, %p2206_p0 }
 0x591   :  { %v651_v53 = vpop.xlane.xlu0 %650 }
 0x592   :  { %2015 = vrcp.f32 %v651_v53 }
 0x595   :  { %v648_v54 = vpop.xlane.xlu0 %647 }
 0x596   :  { %2017 = vrcp.f32 %v648_v54 }
 0x599   :  { %v659_v55 = vpop.permute.xlu0 %658 }
 0x59a   :  { %1869 = vmatpush3.bf16.msra.mxu0 %v659_v55 }
 0x59b   :  { %1880 = vmatprep.subr.bf16.mxu0 %v2246_v0 }
 0x59c   :  { %v2016_v56 = vpop.eup %2015 }
 0x59d   :  { %v655_v58 = vmul.f32 %v2016_v56, %v2012_v49  ;;  %v849_v23 = vpop.permute.xlu0 %848 }
 0x59f   :  { %v657_v59 = vpack.c.bf16 %v655_v58, %v655_v58 }
 0x5a0   :  { %v2018_v61 = vpop.eup %2017 }
 0x5a1   :  { %v654_v1 = vmul.f32 %v2018_v61, %v2014_v51  ;;  %1877 = vmatmul.mubr.msk.bf16.vlgmr.msra.gmra.mrb[16].mxu1 %vm411_vm3, %v657_v59 }
 0x5a2   :  { %1887 = vmatpush3.bf16.msra.mxu1 %v805_v60  ;;  %1888 = vmatprep.mubr.msk.bf16.mxu1 %vm2247_vm0, %v2246_v0 }
 0x5a3   :  { %v656_v2 = vpack.c.bf16 %v654_v1, %v654_v1  ;;  %1898 = vmatprep.subr.bf16.mxu1 %v2246_v0 }
 0x5a5   :  { %1871 = vmatmul.mubr.msk.bf16.vlgmr.msra.gmra.mrb[16].mxu0 %vm411_vm3, %v656_v2 }
 0x5a6   :  { %1881 = vmatpush3.bf16.msra.mxu0 %v758_v3  ;;  %1882 = vmatprep.mubr.msk.bf16.mxu0 %vm2247_vm0, %v2246_v0 }
 0x5a7   :  { %1892 = vmatprep.subr.bf16.mxu0 %v2246_v0 }
 0x5a9   :  { %1889 = vmatmul.mubr.msk.bf16.vlgmr.msra.gmra.mrb[20].mxu1 %vm318_vm2, %v530_v20 }
 0x5aa   :  { %1900 = vmatprep.mubr.msk.bf16.mxu1 %vm2247_vm0, %v2246_v0 }
 0x5ab   :  { %1899 = vmatpush3.bf16.xpose.msra.mxu1 %v906_v5 }
 0x5ac   :  { %1910 = vmatprep.subr.bf16.mxu1 %v2246_v0 }
 0x5b2   :  { %1901 = vmatmul.mubr.msk.bf16.vlgmr.msra.gmra.mrb[24].mxu1 %vm318_vm2, %v899_v6 }
 0x5b3   :  { %1912 = vmatprep.mubr.msk.bf16.mxu1 %vm2247_vm0, %v2246_v0 }
 0x674   :  { %v744_v7 = vpop.f32.mrb[16].mxu1 }
 0x675   :  { %v1878_v8 = vpop.f32.mrb[17].mxu1 }
 0x676   :  { %v747_v9 = vpop.f32.mrb[18].mxu1 }
 0x677   :  { %v1879_v12 = vpop.f32.mrb[19].mxu1 }
 0x678   :  { %v698_v13 = vpop.f32.mrb[16].mxu0  ;;  %v1066_v12 = vld [vmem:[#allocation10 + $0x8] sm:$0xf] }
 0x679   :  { %v750_v14 = vpack.c.bf16 %v744_v7, %v698_v13  ;;  %v1872_v15 = vpop.f32.mrb[17].mxu0  ;;  %v1071_v13 = vsel %vm756_vm4, %v1066_v12, 0 }
 0x67a   :  { %v701_v16 = vpop.f32.mrb[18].mxu0 }
 0x67b   :  { %v1873_v18 = vpop.f32.mrb[19].mxu0  ;;  %1883 = vmatmul.mubr.msk.bf16.vlgmr.msra.gmra.mrb[20].mxu0 %vm318_vm2, %v750_v14 }
 0x67c   :  { %1893 = vmatpush3.bf16.xpose.msra.mxu0 %v856_v17  ;;  %v841_v19 = vpop.f32.mrb[20].mxu1  ;;  %1894 = vmatprep.mubr.msk.bf16.mxu0 %vm2247_vm0, %v2246_v0 }
 0x67d   :  { %v1890_v20 = vpop.f32.mrb[21].mxu1  ;;  %1904 = vmatprep.subr.bf16.mxu0 %v2246_v0 }
 0x67e   :  { %v844_v21 = vpop.f32.mrb[22].mxu1 }
 0x67f   :  { %v1891_v22 = vpop.f32.mrb[23].mxu1 }
 0x683   :  { %1895 = vmatmul.mubr.msk.bf16.vlgmr.msra.gmra.mrb[24].mxu0 %vm318_vm2, %v849_v23 }
 0x684   :  { %1906 = vmatprep.mubr.msk.bf16.mxu0 %vm2247_vm0, %v2246_v0 }
 0x685   :  { %v942_v24 = vpop.f32.mrb[24].mxu1 }
 0x686   :  { %v943_v25 = vadd.f32 %v2527_v39, %v942_v24  ;;  %v1902_v27 = vpop.f32.mrb[25].mxu1 }
 0x687   :  { %v945_v29 = vpop.f32.mrb[26].mxu1 }
 0x688   :  { %v1903_v30 = vpop.f32.mrb[27].mxu1  ;;  %v951_v31 = vsel %vm411_vm3, %v943_v25, -inf }
 0x689   :  { %952 = vmax.xlane.f32.xlu1 %v951_v31 }
 0x69a   :  { %1018 = vrot.lane.b32.xlu1 %v2492_v26, %s2252_s21 }
 0x69e   :  { %1118 = vrot.lane.b32.xlu1 %v2494_v28, %s2253_s19 }
 0x6a2   :  { %1168 = vrot.lane.b32.xlu1 %v2492_v26, %s2253_s19 }
 0x6a6   :  { %1166 = vrot.lane.b32.xlu1 %v2504_v34, %s2253_s19 }
 0x716   :  { %v953_v32 = vpop.xlane.xlu1 %952 }
 0x717   :  { %v955_v36 = vsub.f32 %v943_v25, %v953_v32 }
 0x719   :  { %v958_v38 = vmul.f32 1.442695, %v955_v36 }
 0x71a   :  { %v1019_v33 = vpop.permute.xlu1 %1018 }
 0x71b   :  { %1911 = vmatpush3.bf16.msra.mxu1 %v1019_v33  ;;  %2019 = vpow2.f32 %v958_v38 }
 0x71c   :  { %1922 = vmatprep.subr.bf16.mxu1 %v2246_v0 }
 0x71e   :  { %v1119_v61 = vpop.permute.xlu1 %1118 }
 0x71f   :  { %v1124_v63 = vsel %vm318_vm2, %v1119_v61, 0 }
 0x722   :  { %v1169_v20 = vpop.permute.xlu1 %1168 }
 0x723   :  { %v1174_v25 = vsel %vm318_vm2, %v1169_v20, 0 }
 0x725   :  { %v2020_v51 = vpop.eup %2019 }
 0x726   :  { %v963_v52 = vsel %vm411_vm3, %v2020_v51, 0.0 }
 0x74e   :  { %v794_v40 = vpop.f32.mrb[20].mxu0 }
 0x74f   :  { %v2620_v41 = vadd.f32 %v841_v19, %v794_v40  ;;  %v1884_v42 = vpop.f32.mrb[21].mxu0 }
 0x750   :  { %v797_v43 = vpop.f32.mrb[22].mxu0 }
 0x751   :  { %v2622_v44 = vadd.f32 %v844_v21, %v797_v43  ;;  %v1885_v45 = vpop.f32.mrb[23].mxu0 }
 0x756   :  { %v892_v46 = vpop.f32.mrb[24].mxu0 }
 0x757   :  { %v893_v47 = vadd.f32 %v2522_v37, %v892_v46  ;;  %v1896_v34 = vpop.f32.mrb[25].mxu0 }
 0x758   :  { %v895_v48 = vpop.f32.mrb[26].mxu0 }
 0x759   :  { %v1897_v49 = vpop.f32.mrb[27].mxu0  ;;  %v948_v50 = vsel %vm411_vm3, %v893_v47, -inf }
 0x75a   :  { %949 = vmax.xlane.f32.xlu0 %v948_v50 }
 0x75e   :  { %964 = vadd.xlane.f32.xlu0 %v963_v52 }
 0x7e7   :  { %v950_v53 = vpop.xlane.xlu0 %949 }
 0x7e8   :  { %v954_v54 = vsub.f32 %v893_v47, %v950_v53 }
 0x7ea   :  { %v956_v55 = vmul.f32 1.442695, %v954_v54 }
 0x7eb   :  { %v965_v56 = vpop.xlane.xlu0 %964 }
 0x7ec   :  { %2021 = vpow2.f32 %v956_v55 }
 0x7ed   :  { %2023 = vrcp.f32 %v965_v56 }
 0x7f6   :  { %v2022_v57 = vpop.eup %2021 }
 0x7f7   :  { %v2024_v58 = vpop.eup %2023  ;;  %v960_v59 = vsel %vm411_vm3, %v2022_v57, 0.0 }
 0x7f8   :  { %v969_v60 = vmul.f32 %v2024_v58, %v2020_v51  ;;  %961 = vadd.xlane.f32.xlu0 %v960_v59 }
 0x7fa   :  { %v971_v62 = vpack.c.bf16 %v969_v60, %v969_v60 }
 0x7fc   :  { %1913 = vmatmul.mubr.msk.bf16.vlgmr.msra.gmra.mrb[28].mxu1 %vm411_vm3, %v971_v62 }
 0x7fd   :  { %1923 = vmatpush3.bf16.xpose.msra.mxu1 %v1124_v63  ;;  %1924 = vmatprep.mubr.msk.bf16.mxu1 %vm2247_vm0, %v2246_v0 }
 0x7fe   :  { %1934 = vmatprep.subr.bf16.mxu1 %v2246_v0 }
 0x80e   :  { %972 = vrot.lane.b32.xlu0 %v2494_v28, %s2252_s21 }
 0x812   :  { %1116 = vrot.lane.b32.xlu0 %v2508_v35, %s2253_s19 }
 0x885   :  { %v962_v1 = vpop.xlane.xlu0 %961 }
 0x886   :  { %2025 = vrcp.f32 %v962_v1 }
 0x889   :  { %v973_v2 = vpop.permute.xlu0 %972 }
 0x88a   :  { %1905 = vmatpush3.bf16.msra.mxu0 %v973_v2 }
 0x88b   :  { %1916 = vmatprep.subr.bf16.mxu0 %v2246_v0 }
 0x88d   :  { %v1117_v3 = vpop.permute.xlu0 %1116 }
 0x88e   :  { %1925 = vmatmul.mubr.msk.bf16.vlgmr.msra.gmra.mrb[32].mxu1 %vm318_vm2, %v1117_v3 }
 0x88f   :  { %1936 = vmatprep.mubr.msk.bf16.mxu1 %vm2247_vm0, %v2246_v0 }
 0x890   :  { %v2026_v4 = vpop.eup %2025 }
 0x891   :  { %v968_v5 = vmul.f32 %v2026_v4, %v2022_v57 }
 0x893   :  { %v970_v6 = vpack.c.bf16 %v968_v5, %v968_v5 }
 0x895   :  { %1907 = vmatmul.mubr.msk.bf16.vlgmr.msra.gmra.mrb[28].mxu0 %vm411_vm3, %v970_v6 }
 0x896   :  { %1918 = vmatprep.mubr.msk.bf16.mxu0 %vm2247_vm0, %v2246_v0  ;;  %1917 = vmatpush3.bf16.msra.mxu0 %v1071_v13 }
 0x897   :  { %1928 = vmatprep.subr.bf16.mxu0 %v2246_v0 }
 0x8cf   :  { %v1058_v35 = vpop.f32.mrb[28].mxu1 }
 0x8d0   :  { %v1914_v7 = vpop.f32.mrb[29].mxu1 }
 0x8d1   :  { %v1061_v8 = vpop.f32.mrb[30].mxu1 }
 0x8d2   :  { %v1915_v9 = vpop.f32.mrb[31].mxu1 }
 0x8d3   :  { %v1746_v9 = vld [vmem:[#allocation11] ss:$0 sm:$0xff] }
 0x961   :  { %v1160_v14 = vpop.f32.mrb[32].mxu1 }
 0x962   :  { %v1161_v15 = vadd.f32 %v2522_v37, %v1160_v14  ;;  %v1926_v16 = vpop.f32.mrb[33].mxu1  ;;  %v1167_v37 = vpop.permute.xlu1 %1166 }
 0x963   :  { %v1163_v17 = vpop.f32.mrb[34].mxu1 }
 0x964   :  { %v1927_v18 = vpop.f32.mrb[35].mxu1  ;;  %v1216_v19 = vsel %vm411_vm3, %v1161_v15, -inf }
 0x965   :  { %1217 = vmax.xlane.f32.xlu0 %v1216_v19 }
 0x968   :  { %v1012_v21 = vpop.f32.mrb[28].mxu0 }
 0x969   :  { %v1064_v22 = vpack.c.bf16 %v1058_v35, %v1012_v21  ;;  %v1908_v23 = vpop.f32.mrb[29].mxu0 }
 0x96a   :  { %v1015_v24 = vpop.f32.mrb[30].mxu0 }
 0x96b   :  { %v1909_v27 = vpop.f32.mrb[31].mxu0  ;;  %1919 = vmatmul.mubr.msk.bf16.vlgmr.msra.gmra.mrb[32].mxu0 %vm318_vm2, %v1064_v22 }
 0x96c   :  { %1929 = vmatpush3.bf16.xpose.msra.mxu0 %v1174_v25  ;;  %1930 = vmatprep.mubr.msk.bf16.mxu0 %vm2247_vm0, %v2246_v0 }
 0x96d   :  { %1940 = vmatprep.subr.bf16.mxu0 %v2246_v0 }
 0x973   :  { %1931 = vmatmul.mubr.msk.bf16.vlgmr.msra.gmra.mrb[36].mxu0 %vm318_vm2, %v1167_v37 }
 0x974   :  { %1942 = vmatprep.mubr.msk.bf16.mxu0 %vm2247_vm0, %v2246_v0 }
 0x9f2   :  { %v1218_v29 = vpop.xlane.xlu0 %1217 }
 0x9f3   :  { %v1222_v30 = vsub.f32 %v1161_v15, %v1218_v29 }
 0x9f5   :  { %v1224_v31 = vmul.f32 1.442695, %v1222_v30 }
 0x9f7   :  { %2027 = vpow2.f32 %v1224_v31 }
 0xa01   :  { %v2028_v32 = vpop.eup %2027 }
 0xa02   :  { %v1228_v33 = vsel %vm411_vm3, %v2028_v32, 0.0 }
 0xa03   :  { %1229 = vadd.xlane.f32.xlu0 %v1228_v33  ;;  %v1998_v33 = vld [vmem:[%s2758_s11 + $0x8] sm:$0xff]  }
 0xa3e   :  { %v1107_v36 = vpop.f32.mrb[32].mxu0 }
 0xa3f   :  { %v1114_v38 = vadd.f32 %v1107_v36, %v2620_v41  ;;  %v1920_v40 = vpop.f32.mrb[33].mxu0 }
 0xa40   :  { %v1110_v42 = vpop.f32.mrb[34].mxu0 }
 0xa41   :  { %v1115_v43 = vadd.f32 %v1110_v42, %v2622_v44  ;;  %v1921_v45 = vpop.f32.mrb[35].mxu0 }
 0xa46   :  { %v1210_v46 = vpop.f32.mrb[36].mxu0 }
 0xa47   :  { %v1211_v47 = vadd.f32 %v2527_v39, %v1210_v46  ;;  %v1932_v34 = vpop.f32.mrb[37].mxu0 }
 0xa48   :  { %v1213_v48 = vpop.f32.mrb[38].mxu0 }
 0xa49   :  { %v1933_v49 = vpop.f32.mrb[39].mxu0  ;;  %v1219_v50 = vsel %vm411_vm3, %v1211_v47, -inf }
 0xa4a   :  { %1220 = vmax.xlane.f32.xlu1 %v1219_v50 }
 0xa5b   :  { %1286 = vrot.lane.b32.xlu1 %v2492_v26, %s2254_s9 }
 0xa90   :  { %v1230_v54 = vpop.xlane.xlu0 %1229 }
 0xad7   :  { %v1221_v51 = vpop.xlane.xlu1 %1220 }
 0xad8   :  { %v1223_v52 = vsub.f32 %v1211_v47, %v1221_v51  ;;  %v1747_v47 = vld [vmem:[#allocation13] ss:$0 sm:$0xff]  ;;  %v1748_v51 = vld [vmem:[%s2757_s10] ss:$0 sm:$0xff] }
 0xada   :  { %v1226_v41 = vmul.f32 1.442695, %v1223_v52 }
 0xadb   :  { %v1287_v53 = vpop.permute.xlu1 %1286 }
 0xadc   :  { %2029 = vpow2.f32 %v1226_v41  ;;  %1941 = vmatpush3.bf16.msra.mxu0 %v1287_v53 }
 0xadd   :  { %1952 = vmatprep.subr.bf16.mxu0 %v2246_v0  ;;  %2031 = vrcp.f32 %v1230_v54  ;;  %v2000_v54 = vld [vmem:[%s2760_s13 + $0x8] sm:$0xff]  }
 0xae6   :  { %v2030_v44 = vpop.eup %2029 }
 0xae7   :  { %v1231_v39 = vsel %vm411_vm3, %v2030_v44, 0.0  ;;  %v2032_v55 = vpop.eup %2031 }
 0xae8   :  { %1232 = vadd.xlane.f32.xlu0 %v1231_v39  ;;  %v1236_v26 = vmul.f32 %v2032_v55, %v2028_v32  ;;  %v1999_v39 = vld [vmem:[%s2760_s13] sm:$0xff]   ;;  %v2001_v55 = vld [vmem:[%s2760_s13 + $0x10] sm:$0xff]  }
 0xaea   :  { %v1238_v58 = vpack.c.bf16 %v1236_v26, %v1236_v26  ;;  %v1749_v26 = vld [vmem:[%s2759_s12] ss:$0 sm:$0xff] }
 0xafe   :  { %1240 = vrot.lane.b32.xlu0 %v2494_v28, %s2254_s9  ;;  %v1334_v28 = vld [vmem:[#allocation10 + $0xc] sm:$0xf] }
 0xaff   :  { %v1339_v62 = vsel %vm756_vm4, %v1334_v28, 0 }
 0xb75   :  { %v1233_v56 = vpop.xlane.xlu0 %1232 }
 0xb76   :  { %2033 = vrcp.f32 %v1233_v56  ;;  %v2002_v56 = vld [vmem:[%s2760_s13 + $0x18] sm:$0xff]  }
 0xb79   :  { %v1241_v57 = vpop.permute.xlu0 %1240 }
 0xb7a   :  { %1935 = vmatpush3.bf16.msra.mxu1 %v1241_v57 }
 0xb7b   :  { %1946 = vmatprep.subr.bf16.mxu1 %v2246_v0 }
 0xb7d   :  { %1937 = vmatmul.mubr.msk.bf16.vlgmr.msra.gmra.mrb[36].mxu1 %vm411_vm3, %v1238_v58 }
 0xb7e   :  { %1948 = vmatprep.mubr.msk.bf16.mxu1 %vm2247_vm0, %v2246_v0  ;;  %1947 = vmatpush3.bf16.msra.mxu1 %v1339_v62 }
 0xb7f   :  { %1960 = vmatprep.subr.bf16.mxu1 %v2246_v0 }
 0xb80   :  { %v2034_v59 = vpop.eup %2033 }
 0xb81   :  { %v1237_v60 = vmul.f32 %v2034_v59, %v2030_v44 }
 0xb83   :  { %v1239_v61 = vpack.c.bf16 %v1237_v60, %v1237_v60 }
 0xb85   :  { %1943 = vmatmul.mubr.msk.bf16.vlgmr.msra.gmra.mrb[40].mxu0 %vm411_vm3, %v1239_v61 }
 0xb86   :  { %1956 = vmatprep.mubr.msk.bf16.mxu0 %vm2247_vm0, %v2246_v0 }
 0xc50   :  { %v1280_v63 = vpop.f32.mrb[36].mxu1 }
 0xc51   :  { %v1938_v1 = vpop.f32.mrb[37].mxu1 }
 0xc52   :  { %v1283_v2 = vpop.f32.mrb[38].mxu1 }
 0xc53   :  { %v1939_v3 = vpop.f32.mrb[39].mxu1 }
 0xc58   :  { %v1326_v4 = vpop.f32.mrb[40].mxu0 }
 0xc59   :  { %v1332_v5 = vpack.c.bf16 %v1326_v4, %v1280_v63  ;;  %v1944_v6 = vpop.f32.mrb[41].mxu0 }
 0xc5a   :  { %v1329_v35 = vpop.f32.mrb[42].mxu0 }
 0xc5b   :  { %v1945_v7 = vpop.f32.mrb[43].mxu0  ;;  %1949 = vmatmul.mubr.msk.bf16.vlgmr.msra.gmra.mrb[40].mxu1 %vm318_vm2, %v1332_v5 }
 0xc5c   :  { %1968 = vmatprep.mubr.msk.bf16.mxu1 %vm2247_vm0, %v2246_v0  ;;  %1961 = vmatpush3.bf16.msra.mxu1 %v1999_v39  ;;  %v1753_v39 = vld [vmem:[%s2761_s14] ss:$0 sm:$0xff] }
 0xc5d   :  { %1962 = vmatprep.subr.bf16.mxu1 %v2246_v0 }
 0xc60   :  { %1963 = vmatpush3.bf16.msra.mxu1 %v2000_v54 }
 0xc61   :  { %1964 = vmatprep.subr.bf16.mxu1 %v2246_v0 }
 0xc64   :  { %1965 = vmatpush3.bf16.msra.mxu1 %v2001_v55 }
 0xc65   :  { %1966 = vmatprep.subr.bf16.mxu1 %v2246_v0 }
 0xc68   :  { %1967 = vmatpush3.bf16.msra.mxu1 %v2002_v56 }
 0xd2e   :  { %v1375_v8 = vpop.f32.mrb[40].mxu1 }
 0xd2f   :  { %v1382_v12 = vadd.f32 %v1375_v8, %v1114_v38  ;;  %v1950_v13 = vpop.f32.mrb[41].mxu1 }
 0xd30   :  { %v1378_v14 = vpop.f32.mrb[42].mxu1 }
 0xd31   :  { %v1391_v15 = vadd.f32 %v1746_v9, %v1382_v12  ;;  %v1383_v16 = vadd.f32 %v1378_v14, %v1115_v43  ;;  %v1951_v17 = vpop.f32.mrb[43].mxu1 }
 0xd33   :  { %v1392_v18 = vadd.f32 %v1746_v9, %v1383_v16  ;;  %v1393_v19 = vadd.f32 %v1391_v15, %v2474_v10 }
 0xd35   :  { %v1397_v20 = vsel %vm177_vm1, %v1393_v19, 0.0  ;;  %v1394_v21 = vadd.f32 %v1392_v18, %v2479_v11  ;;  %v1997_v11 = vld [vmem:[%s2758_s11] sm:$0xff]  }
 0xd36   :  { %1398 = vadd.xlane.f32.xlu1 %v1397_v20  ;;  %1953 = vmatpush3.bf16.msra.mxu0 %v1997_v11 }
 0xd37   :  { %v1400_v22 = vsel %vm177_vm1, %v1394_v21, 0.0  ;;  %1954 = vmatprep.subr.bf16.mxu0 %v2246_v0 }
 0xd38   :  { %1401 = vadd.xlane.f32.xlu0 %v1400_v22 }
 0xd3a   :  { %1955 = vmatpush3.bf16.msra.mxu0 %v1998_v33 }
 0xdc3   :  { %v1399_v23 = vpop.xlane.xlu1 %1398 }
 0xdc4   :  { %v1404_v24 = vmul.f32 0.03125, %v1399_v23 }
 0xdc5   :  { %v1402_v25 = vpop.xlane.xlu0 %1401 }
 0xdc6   :  { %v1406_v27 = vsub.f32 %v1393_v19, %v1404_v24  ;;  %v1405_v37 = vmul.f32 0.03125, %v1402_v25 }
 0xdc8   :  { %v1407_v29 = vsub.f32 %v1394_v21, %v1405_v37  ;;  %v1408_v30 = vmul.f32 %v1406_v27, %v1406_v27 }
 0xdca   :  { %v1410_v31 = vsel %vm177_vm1, %v1408_v30, 0.0  ;;  %v1409_v32 = vmul.f32 %v1407_v29, %v1407_v29 }
 0xdcb   :  { %1411 = vadd.xlane.f32.xlu0 %v1410_v31 }
 0xdcc   :  { %v1413_v10 = vsel %vm177_vm1, %v1409_v32, 0.0 }
 0xdcd   :  { %1414 = vadd.xlane.f32.xlu1 %v1413_v10 }
 0xe58   :  { %v1412_v36 = vpop.xlane.xlu0 %1411 }
 0xe59   :  { %v1416_v38 = vmul.f32 0.03125, %v1412_v36 }
 0xe5a   :  { %v1415_v40 = vpop.xlane.xlu1 %1414 }
 0xe5b   :  { %v1418_v42 = vadd.f32 1e-12, %v1416_v38  ;;  %v1417_v43 = vmul.f32 0.03125, %v1415_v40 }
 0xe5d   :  { %2035 = vrsqrt.f32 %v1418_v42  ;;  %v1419_v45 = vadd.f32 1e-12, %v1417_v43 }
 0xe5f   :  { %2037 = vrsqrt.f32 %v1419_v45 }
 0xe67   :  { %v2036_v46 = vpop.eup %2035 }
 0xe68   :  { %v1422_v34 = vmul.f32 %v2036_v46, %v1406_v27 }
 0xe69   :  { %v2038_v48 = vpop.eup %2037 }
 0xe6a   :  { %v1430_v49 = vmul.f32 %v1747_v47, %v1422_v34  ;;  %v1423_v50 = vmul.f32 %v2038_v48, %v1407_v29 }
 0xe6c   :  { %v1431_v52 = vmul.f32 %v1747_v47, %v1423_v50  ;;  %v2693_v41 = vadd.f32 %v1748_v51, %v1430_v49 }
 0xe6e   :  { %v2695_v53 = vadd.f32 %v1748_v51, %v1431_v52 }
 0xe70   :  { %v1440_v44 = vpack.c.bf16 %v2695_v53, %v2693_v41 }
 0xe72   :  { %1957 = vmatmul.mubr.msk.bf16.vlgmr.msra.gmra.mrb[44].mxu0 %vm177_vm1, %v1440_v44 }
 0xf45   :  { %v1501_v57 = vpop.f32.mrb[44].mxu0 }
 0xf46   :  { %v1502_v58 = vadd.f32 %v1749_v26, %v1501_v57  ;;  %v1958_v59 = vpop.f32.mrb[45].mxu0 }
 0xf47   :  { %v1504_v60 = vpop.f32.mrb[46].mxu0 }
 0xf48   :  { %v1510_v61 = vmul.f32 0.70710677, %v1502_v58  ;;  %v1505_v28 = vadd.f32 %v1749_v26, %v1504_v60  ;;  %v1959_v62 = vpop.f32.mrb[47].mxu0  ;;  %v1508_v48 = vmul.f32 0.5, %v1502_v58 }
 0xf4a   :  { %v1512_v63 = vand.u32 2147483647, %v1510_v61  ;;  %v1511_v1 = vmul.f32 0.70710677, %v1505_v28  ;;  %vm1552_vm5 = vcmp.ge.f32.partialorder %v1510_v61, 0.0  ;;  %v1509_v49 = vmul.f32 0.5, %v1505_v28 }
 0xf4c   :  { %v1514_v2 = vmul.f32 0.3275911, %v1512_v63  ;;  %v1513_v0 = vand.u32 2147483647, %v1511_v1  ;;  %v1540_v6 = vsub.f32 0.0, %v1512_v63  ;;  %vm1553_vm6 = vcmp.ge.f32.partialorder %v1511_v1, 0.0 }
 0xf4e   :  { %v1516_v3 = vadd.f32 1.0, %v1514_v2  ;;  %v1515_v4 = vmul.f32 0.3275911, %v1513_v0  ;;  %v1541_v35 = vsub.f32 0.0, %v1513_v0  ;;  %v1542_v8 = vmul.f32 %v1540_v6, %v1512_v63 }
 0xf50   :  { %2039 = vrcp.f32 %v1516_v3  ;;  %v1517_v5 = vadd.f32 1.0, %v1515_v4  ;;  %v1543_v14 = vmul.f32 %v1541_v35, %v1513_v0  ;;  %v1544_v15 = vmul.f32 1.442695, %v1542_v8 }
 0xf52   :  { %2041 = vrcp.f32 %v1517_v5  ;;  %v1546_v20 = vmul.f32 1.442695, %v1543_v14  ;;  %v1759_v14 = vld [vmem:[%s2762_s15] ss:$0 sm:$0xff] }
 0xf53   :  { %2043 = vpow2.f32 %v1544_v15 }
 0xf54   :  { %2045 = vpow2.f32 %v1546_v20 }
 0xf5a   :  { %v2040_v7 = vpop.eup %2039 }
 0xf5b   :  { %v1522_v9 = vmul.f32 1.0614054, %v2040_v7 }
 0xf5c   :  { %v2042_v12 = vpop.eup %2041 }
 0xf5d   :  { %v1524_v13 = vadd.f32 -1.4531521, %v1522_v9  ;;  %v1523_v16 = vmul.f32 1.0614054, %v2042_v12  ;;  %v2044_v32 = vpop.eup %2043 }
 0xf5e   :  { %v2046_v36 = vpop.eup %2045 }
 0xf5f   :  { %v1526_v17 = vmul.f32 %v2040_v7, %v1524_v13  ;;  %v1525_v18 = vadd.f32 -1.4531521, %v1523_v16 }
 0xf61   :  { %v1528_v19 = vadd.f32 1.4214138, %v1526_v17  ;;  %v1527_v21 = vmul.f32 %v2042_v12, %v1525_v18  ;;  %v1760_v17 = vld [vmem:[%s2763_s16] ss:$0 sm:$0xff] }
 0xf63   :  { %v1530_v22 = vmul.f32 %v2040_v7, %v1528_v19  ;;  %v1529_v23 = vadd.f32 1.4214138, %v1527_v21 }
 0xf65   :  { %v1532_v24 = vadd.f32 -0.28449672, %v1530_v22  ;;  %v1531_v25 = vmul.f32 %v2042_v12, %v1529_v23 }
 0xf67   :  { %v1534_v27 = vmul.f32 %v2040_v7, %v1532_v24  ;;  %v1533_v37 = vadd.f32 -0.28449672, %v1531_v25 }
 0xf69   :  { %v1536_v29 = vadd.f32 0.2548296, %v1534_v27  ;;  %v1535_v30 = vmul.f32 %v2042_v12, %v1533_v37 }
 0xf6b   :  { %v1538_v31 = vmul.f32 %v2040_v7, %v1536_v29  ;;  %v1537_v10 = vadd.f32 0.2548296, %v1535_v30 }
 0xf6d   :  { %v1548_v11 = vmul.f32 %v2044_v32, %v1538_v31  ;;  %v1539_v33 = vmul.f32 %v2042_v12, %v1537_v10 }
 0xf6f   :  { %v1550_v38 = vsub.f32 1.0, %v1548_v11  ;;  %v1549_v40 = vmul.f32 %v2046_v36, %v1539_v33 }
 0xf71   :  { %v1554_v42 = vsub.f32 0.0, %v1550_v38  ;;  %v1551_v43 = vsub.f32 1.0, %v1549_v40 }
 0xf73   :  { %v1556_v45 = vsel %vm1552_vm5, %v1550_v38, %v1554_v42  ;;  %v1555_v46 = vsub.f32 0.0, %v1551_v43 }
 0xf74   :  { %v1558_v47 = vadd.f32 1.0, %v1556_v45 }
 0xf75   :  { %v1557_v34 = vsel %vm1553_vm6, %v1551_v43, %v1555_v46 }
 0xf76   :  { %v1559_v50 = vadd.f32 1.0, %v1557_v34  ;;  %v1560_v51 = vmul.f32 %v1558_v47, %v1508_v48 }
 0xf78   :  { %v1561_v52 = vmul.f32 %v1559_v50, %v1509_v49 }
 0xf7a   :  { %v1562_v44 = vpack.c.bf16 %v1561_v52, %v1560_v51 }
 0xf7c   :  { %1969 = vmatmul.mubr.msk.bf16.vlgmr.msra.gmra.mrb[44].mxu1 %vm1602_vm7, %v1562_v44 }
0x104f   :  { %v1640_v54 = vpop.f32.mrb[44].mxu1 }
0x1050   :  { %v1641_v55 = vadd.f32 %v1753_v39, %v1640_v54  ;;  %v1970_v56 = vpop.f32.mrb[45].mxu1 }
0x1051   :  { %v1643_v26 = vpop.f32.mrb[46].mxu1 }
0x1052   :  { %v1644_v57 = vadd.f32 %v1753_v39, %v1643_v26  ;;  %v1971_v59 = vpop.f32.mrb[47].mxu1  ;;  %v1647_v60 = vadd.f32 %v1641_v55, %v2693_v41 }
0x1054   :  { %v1651_v58 = vsel %vm177_vm1, %v1647_v60, 0.0  ;;  %v1648_v61 = vadd.f32 %v1644_v57, %v2695_v53 }
0x1055   :  { %1652 = vadd.xlane.f32.xlu0 %v1651_v58 }
0x1056   :  { %v1654_v28 = vsel %vm177_vm1, %v1648_v61, 0.0 }
0x1057   :  { %1655 = vadd.xlane.f32.xlu1 %v1654_v28 }
0x10e2   :  { %v1653_v62 = vpop.xlane.xlu0 %1652 }
0x10e3   :  { %v1657_v63 = vmul.f32 0.03125, %v1653_v62 }
0x10e4   :  { %v1656_v1 = vpop.xlane.xlu1 %1655 }
0x10e5   :  { %v1659_v2 = vsub.f32 %v1647_v60, %v1657_v63  ;;  %v1658_v0 = vmul.f32 0.03125, %v1656_v1 }
0x10e7   :  { %v1660_v3 = vsub.f32 %v1648_v61, %v1658_v0  ;;  %v1661_v4 = vmul.f32 %v1659_v2, %v1659_v2 }
0x10e9   :  { %v1663_v5 = vsel %vm177_vm1, %v1661_v4, 0.0  ;;  %v1662_v6 = vmul.f32 %v1660_v3, %v1660_v3 }
0x10ea   :  { %1664 = vadd.xlane.f32.xlu0 %v1663_v5 }
0x10eb   :  { %v1666_v41 = vsel %vm177_vm1, %v1662_v6, 0.0 }
0x10ec   :  { %1667 = vadd.xlane.f32.xlu1 %v1666_v41 }
0x1177   :  { %v1665_v35 = vpop.xlane.xlu0 %1664 }
0x1178   :  { %v1669_v53 = vmul.f32 0.03125, %v1665_v35 }
0x1179   :  { %v1668_v7 = vpop.xlane.xlu1 %1667 }
0x117a   :  { %v1671_v8 = vadd.f32 1e-12, %v1669_v53  ;;  %v1670_v9 = vmul.f32 0.03125, %v1668_v7 }
0x117c   :  { %2047 = vrsqrt.f32 %v1671_v8  ;;  %v1672_v12 = vadd.f32 1e-12, %v1670_v9 }
0x117e   :  { %2049 = vrsqrt.f32 %v1672_v12 }
0x1186   :  { %v2048_v13 = vpop.eup %2047 }
0x1187   :  { %v1675_v15 = vmul.f32 %v2048_v13, %v1659_v2 }
0x1188   :  { %v2050_v16 = vpop.eup %2049 }
0x1189   :  { %v1683_v18 = vmul.f32 %v1759_v14, %v1675_v15  ;;  %v1676_v19 = vmul.f32 %v2050_v16, %v1660_v3 }
0x118b   :  { %v1684_v20 = vmul.f32 %v1759_v14, %v1676_v19  ;;  %v1691_v21 = vadd.f32 %v1760_v17, %v1683_v18 }
0x118d   :  { %v1692_v22 = vadd.f32 %v1760_v17, %v1684_v20  ;;  %1693 = vst.msk [vmem:[#allocation14] sm:$0xff] %vm177_vm1, %v1691_v21 }
0x118f   :  { %1694 = vst.msk [vmem:[#allocation14 + $0x8] sm:$0xff] %vm177_vm1, %v1692_v22 }
0x1190   :  { %2216 = shalt.err (!%p2213_p4)
}
0x1191   :  { %s2217_s21 = scalar_lea.hbm %s2764_s17, 256 }
0x1192   :  { %p2218_p5 = scmp.ne.s32.totalorder %s2764_s17, %s2217_s21  ;;  %p2221_p6 = scmp.lt.u32.totalorder %s2217_s21, %s2764_s17 }
0x1194   :  { %p2223_p7 = pnand %p2221_p6, %p2218_p5 }
0x1196   :  { %2226 = shalt.err (!%p2223_p7)
}
0x1197   :  { %s2256_s1 = smov 128   ;;  %s2257_s4 = smov 8  }
0x1198   :  { %1706 = dma.vmem_to_hbm [thread:$0]  %s1701_s2, 256, %s2764_s17, [#allocation4], %s2256_s1, %s2256_s1, %s2257_s4  }
0x1199   :  { %2235 = dma.done.wait [#allocation4], 256  }
0x119a   :  { %2236 = vsyncadd [#allocation4], 4294967040 }
0x119b   :  { %1710 = vsyncpa [#allocation3], 1 }
0x119c   :  { %1711 = vsyncpa [#allocation6], 1 }
0x119d   :  { %1712 = vsyncpa [#allocation9], 1 }
0x119e   :  { %1713 = vsyncpa [#allocation12], 1 }
0x119f   :  { %1714 = vsyncpa [#allocation4], 1 }

</bundles_post_ra>
